<compile_context>
chip_gen: v7x
topology: tpu7x:2x2x1
jax: 0.10.0
libtpu: 0.0.40
codegen_flags: <defaults>
</compile_context>

<pallas_src>
import functools

import jax
import jax.numpy as jnp
from jax.experimental import pallas as pl
from jax.experimental.pallas import tpu as pltpu


# Set to jnp.bfloat16 on v6e/v7x for a faster MXU path on the recurrence matmul
# (gated per the review's correctness note -- relax the self-test tolerance to
# ~1e-2 if enabled). Default f32 keeps exact parity with the reference.
HIDDEN_MATMUL_DTYPE = jnp.float32


# ----------------------------------------------------------------------------
# Pallas kernel: fused GRU recurrence + output Linear + output concat.
# ----------------------------------------------------------------------------
def rnn_layer_kernel(x_ref, wih_ref, whh_ref, bfold_ref, bhn_ref,
                     wlin_ref, blin_ref, out_ref, pred_ref, hall_ref,
                     *, pre_len, hidden_matmul_dtype=jnp.float32):
    B, L, C = x_ref.shape
    H = whh_ref.shape[0]
    L_in = L - pre_len                       # timesteps with a real (non-zero) input

    x_all = x_ref[...]                       # (B, L, C)   -- whole input (~KBs)
    wih = wih_ref[...]                       # (C, 3H)     gates packed along lanes (r|z|n)
    whh = whh_ref[...].astype(hidden_matmul_dtype)          # (H, 3H) merged hidden weights
    # Hoisted broadcasts (emitted once, not once per unrolled iteration).
    bias_fold = jnp.broadcast_to(bfold_ref[...], (B, 3 * H))  # b_ih (+ b_hh for r,z)
    b_hn = jnp.broadcast_to(bhn_ref[...], (B, H))              # b_hh_n stays inside r*(...)

    # GRU recurrence: fully unrolled (L=16), hidden state carried in registers.
    # TODO(synk): if L grows beyond ~64, switch to lax.fori_loop(..., unroll=4)
    # or a grid axis marked "arbitrary" to bound trace time / code size.
    h = jnp.zeros((B, H), jnp.float32)       # PyTorch default h0 = 0
    for t in range(L):
        if t < L_in:
            # Input projection for all three gates in one tiny MXU dot; it does
            # not depend on h, so it overlaps with the previous step's chain.
            a_t = jnp.dot(x_all[:, t, :], wih,
                          preferred_element_type=jnp.float32) + bias_fold
        else:
            a_t = bias_fold                  # zero-input tail: biases only

        # Single merged hidden matmul for all three gates (one MXU trip / step).
        hm = jnp.dot(h.astype(hidden_matmul_dtype), whh,
                     preferred_element_type=jnp.float32)        # (B, 3H)

        # r and z share one fused sigmoid; gate extraction = static lane slices.
        # (v5e note: if logistic lowers to exp+recip in the bundle dump, swap in
        #  0.5*jnp.tanh(0.5*x)+0.5 to halve EUP pushes per step.)
        rz = jax.nn.sigmoid(a_t[:, :2 * H] + hm[:, :2 * H])     # (B, 2H)
        r = rz[:, :H]
        z = rz[:, H:]
        n = jnp.tanh(a_t[:, 2 * H:] + r * (hm[:, 2 * H:] + b_hn))
        h = (1.0 - z) * n + z * h
        hall_ref[t] = h                      # leading-index store, off the serial chain

    # Epilogue: hoisted output Linear over all timesteps + fused output concat.
    w_lin = wlin_ref[...]                    # (H, c_out)
    b_lin = blin_ref[...]                    # (1, c_out)
    hs = hall_ref[...]                       # (L, B, H)
    for b in range(B):
        y_b = (jnp.dot(hs[:, b, :], w_lin, preferred_element_type=jnp.float32)
               + b_lin).astype(out_ref.dtype)                    # (L, c_out)
        out_ref[b, pl.ds(0, pre_len), :] = x_all[b, :pre_len, :].astype(out_ref.dtype)
        out_ref[b, pl.ds(pre_len, L), :] = y_b
        pred_ref[b] = y_b.astype(pred_ref.dtype)


# ----------------------------------------------------------------------------
# Wrapper: one pallas_call, no grid, everything resident in VMEM.
# ----------------------------------------------------------------------------
def rnn_layer_forward(x, params, pre_len):
    """x: (B, L, c_in). Returns (out, lstm_pred) like the PyTorch module (eval)."""
    B, L, C = x.shape
    H = params["whh_cat"].shape[0]
    c_out = params["w_lin"].shape[1]
    # The module's final time-concat silently requires matching channel counts.
    assert C == c_out, f"c_in ({C}) must equal c_out ({c_out}) for the output concat"
    x = x.astype(jnp.float32)

    kernel = functools.partial(rnn_layer_kernel, pre_len=pre_len,
                               hidden_matmul_dtype=HIDDEN_MATMUL_DTYPE)
    vmem = lambda: pl.BlockSpec(memory_space=pltpu.MemorySpace.VMEM)

    out, pred = pl.pallas_call(
        kernel,
        out_shape=(jax.ShapeDtypeStruct((B, pre_len + L, c_out), jnp.float32),
                   jax.ShapeDtypeStruct((B, L, c_out), jnp.float32)),
        in_specs=[vmem() for _ in range(7)],
        out_specs=(vmem(), vmem()),
        scratch_shapes=[pltpu.VMEM((L, B, H), jnp.float32)],   # all hidden states
    )(x, params["wih_cat"], params["whh_cat"], params["bias_fold"],
      params["b_hn"], params["w_lin"], params["b_lin"])

    # TODO(synk): torch.nn.Dropout is stochastic in training; identity here (eval).
    return out, pred


# ----------------------------------------------------------------------------
# Parameter prep: PyTorch-layout GRU/Linear weights -> packed kernel layout.
# ----------------------------------------------------------------------------
def prepare_params(w_ih_t, w_hh_t, b_ih_t, b_hh_t, w_lin_t, b_lin_t):
    """torch layouts: W_ih (3H,c_in), W_hh (3H,H), b_* (3H,), W_lin (c_out,H), b (c_out,).
    Gate order is PyTorch's (r, z, n); gates are packed along the last (lane) dim."""
    three_h = w_ih_t.shape[0]
    H = w_hh_t.shape[1]
    c_out = w_lin_t.shape[0]
    assert three_h == 3 * H
    return {
        # x @ wih_cat -> [r | z | n] input pre-activations packed along lanes.
        "wih_cat": jnp.transpose(w_ih_t),                       # (c_in, 3H)
        # h @ whh_cat -> [r | z | n] hidden contributions (single per-step matmul).
        "whh_cat": jnp.transpose(w_hh_t),                       # (H, 3H)
        # Folded bias: b_ih + b_hh for r,z; only b_ih for n (b_hh_n kept inside r*(...)).
        "bias_fold": jnp.concatenate(
            [b_ih_t[:2 * H] + b_hh_t[:2 * H], b_ih_t[2 * H:]]).reshape(1, 3 * H),
        "b_hn": b_hh_t[2 * H:].reshape(1, H),
        "w_lin": jnp.transpose(w_lin_t),                        # (H, c_out)
        "b_lin": b_lin_t.reshape(1, c_out),
    }


# ----------------------------------------------------------------------------
# Pure-JAX reference (lax.scan GRU with PyTorch-layout weights) for validation.
# ----------------------------------------------------------------------------
def gru_linear_ref(x_sbf, w_ih_t, w_hh_t, b_ih_t, b_hh_t, w_lin_t, b_lin_t):
    H = w_hh_t.shape[1]
    B = x_sbf.shape[1]

    def step(h, x_t):
        gi = x_t @ w_ih_t.T + b_ih_t
        gh = h @ w_hh_t.T + b_hh_t
        r = jax.nn.sigmoid(gi[:, :H] + gh[:, :H])
        z = jax.nn.sigmoid(gi[:, H:2 * H] + gh[:, H:2 * H])
        n = jnp.tanh(gi[:, 2 * H:] + r * gh[:, 2 * H:])
        h_new = (1.0 - z) * n + z * h
        return h_new, h_new

    _, hs = jax.lax.scan(step, jnp.zeros((B, H), jnp.float32), x_sbf)
    return hs @ w_lin_t.T + b_lin_t                              # (L, B, c_out)


if __name__ == "__main__":
    # Config consistent with the module: c_in == c_out (needed by the final
    # concat), hidden_size = 20, num_layers = 1, select = 0 (GRU).
    B, L, C = 2, 16, 4
    PRE_LEN = 4
    HIDDEN = 20

    key = jax.random.PRNGKey(0)
    ks = jax.random.split(key, 7)
    bound = 1.0 / (HIDDEN ** 0.5)
    u = lambda k, shape: jax.random.uniform(k, shape, jnp.float32, -bound, bound)

    # PyTorch-layout parameters (gate order r, z, n).
    w_ih_t = u(ks[0], (3 * HIDDEN, C))
    w_hh_t = u(ks[1], (3 * HIDDEN, HIDDEN))
    b_ih_t = u(ks[2], (3 * HIDDEN,))
    b_hh_t = u(ks[3], (3 * HIDDEN,))
    w_lin_t = u(ks[4], (C, HIDDEN))
    b_lin_t = u(ks[5], (C,))

    params = prepare_params(w_ih_t, w_hh_t, b_ih_t, b_hh_t, w_lin_t, b_lin_t)
    x = jax.random.normal(ks[6], (B, L, C), jnp.float32)

    fwd = jax.jit(rnn_layer_forward, static_argnums=(2,))
    out, lstm_pred = fwd(x, params, PRE_LEN)
    jax.block_until_ready((out, lstm_pred))

    # Validate against a pure-JAX scan reference of the original module's math.
    x_lstm = jnp.concatenate(
        [x[:, : L - PRE_LEN, :], jnp.zeros((B, PRE_LEN, C), jnp.float32)], axis=1)
    x_lstm = jnp.transpose(x_lstm, (1, 0, 2))                    # (L, B, C)
    ref = gru_linear_ref(x_lstm, w_ih_t, w_hh_t, b_ih_t, b_hh_t, w_lin_t, b_lin_t)
    ref = jnp.transpose(ref, (1, 0, 2))                          # (B, L, C)

    assert out.shape == (B, PRE_LEN + L, C)
    assert lstm_pred.shape == (B, L, C)
    assert jnp.allclose(lstm_pred, ref, atol=1e-5, rtol=1e-5)
    assert jnp.allclose(out[:, :PRE_LEN, :], x[:, :PRE_LEN, :], atol=1e-6)
    assert jnp.allclose(out[:, PRE_LEN:, :], lstm_pred, atol=1e-6)

    print("KERNEL_OK")
</pallas_src>

<mosaic_0001>
module attributes {stable_mosaic.version = 11 : i64} {
  func.func @rnn_layer_kernel(%arg0: memref<2x16x4xf32, #tpu.memory_space<vmem>>, %arg1: memref<4x60xf32, #tpu.memory_space<vmem>>, %arg2: memref<20x60xf32, #tpu.memory_space<vmem>>, %arg3: memref<1x60xf32, #tpu.memory_space<vmem>>, %arg4: memref<1x20xf32, #tpu.memory_space<vmem>>, %arg5: memref<20x4xf32, #tpu.memory_space<vmem>>, %arg6: memref<1x4xf32, #tpu.memory_space<vmem>>, %arg7: memref<2x20x4xf32, #tpu.memory_space<vmem>>, %arg8: memref<2x16x4xf32, #tpu.memory_space<vmem>>, %arg9: memref<16x2x20xf32, #tpu.memory_space<vmem>>) attributes {dimension_semantics = [], scalar_prefetch = 0 : i64, scratch_operands = 1 : i64, tpu.core_type = #tpu.core_type<tc>} {
    %c0 = arith.constant 0 : index
    %c0_0 = arith.constant 0 : index
    %c0_1 = arith.constant 0 : index
    %0 = vector.load %arg0[%c0, %c0_0, %c0_1] : memref<2x16x4xf32, #tpu.memory_space<vmem>>, vector<2x16x4xf32>
    %c0_2 = arith.constant 0 : index
    %c0_3 = arith.constant 0 : index
    %1 = vector.load %arg1[%c0_2, %c0_3] : memref<4x60xf32, #tpu.memory_space<vmem>>, vector<4x60xf32>
    %c0_4 = arith.constant 0 : index
    %c0_5 = arith.constant 0 : index
    %2 = vector.load %arg2[%c0_4, %c0_5] : memref<20x60xf32, #tpu.memory_space<vmem>>, vector<20x60xf32>
    %c0_6 = arith.constant 0 : index
    %c0_7 = arith.constant 0 : index
    %3 = vector.load %arg3[%c0_6, %c0_7] : memref<1x60xf32, #tpu.memory_space<vmem>>, vector<1x60xf32>
    %4 = vector.shape_cast %3 : vector<1x60xf32> to vector<1x60xf32>
    %5 = vector.broadcast %4 : vector<1x60xf32> to vector<2x60xf32>
    %c0_8 = arith.constant 0 : index
    %c0_9 = arith.constant 0 : index
    %6 = vector.load %arg4[%c0_8, %c0_9] : memref<1x20xf32, #tpu.memory_space<vmem>>, vector<1x20xf32>
    %7 = vector.shape_cast %6 : vector<1x20xf32> to vector<1x20xf32>
    %8 = vector.broadcast %7 : vector<1x20xf32> to vector<2x20xf32>
    %cst = arith.constant 0.000000e+00 : f32
    %9 = vector.broadcast %cst : f32 to vector<2x20xf32>
    %10 = vector.extract_strided_slice %0 {offsets = [0, 0, 0], sizes = [2, 1, 4], strides = [1, 1, 1]} : vector<2x16x4xf32> to vector<2x1x4xf32>
    %11 = vector.shape_cast %10 : vector<2x1x4xf32> to vector<2x4xf32>
    %cst_10 = arith.constant dense<0.000000e+00> : vector<2x60xf32>
    %12 = tpu.matmul %11, %1, %cst_10 {dimension_numbers = #tpu.dot_dimension_numbers<[1], [0], [0], [1], [0, 0, 1, 1], [], []>} : vector<2x4xf32>, vector<4x60xf32>, vector<2x60xf32> -> vector<2x60xf32>
    %13 = arith.addf %12, %5 : vector<2x60xf32>
    %cst_11 = arith.constant dense<0.000000e+00> : vector<2x60xf32>
    %14 = tpu.matmul %9, %2, %cst_11 {dimension_numbers = #tpu.dot_dimension_numbers<[1], [0], [0], [1], [0, 0, 1, 1], [], []>} : vector<2x20xf32>, vector<20x60xf32>, vector<2x60xf32> -> vector<2x60xf32>
    %15 = vector.extract_strided_slice %13 {offsets = [0, 0], sizes = [2, 40], strides = [1, 1]} : vector<2x60xf32> to vector<2x40xf32>
    %16 = vector.extract_strided_slice %14 {offsets = [0, 0], sizes = [2, 40], strides = [1, 1]} : vector<2x60xf32> to vector<2x40xf32>
    %17 = arith.addf %15, %16 : vector<2x40xf32>
    %18 = arith.negf %17 : vector<2x40xf32>
    %19 = math.exp %18 : vector<2x40xf32>
    %cst_12 = arith.constant 1.000000e+00 : f32
    %20 = vector.broadcast %cst_12 : f32 to vector<2x40xf32>
    %21 = arith.addf %20, %19 : vector<2x40xf32>
    %22 = arith.divf %20, %21 : vector<2x40xf32>
    %23 = vector.extract_strided_slice %22 {offsets = [0, 0], sizes = [2, 20], strides = [1, 1]} : vector<2x40xf32> to vector<2x20xf32>
    %24 = vector.extract_strided_slice %22 {offsets = [0, 20], sizes = [2, 20], strides = [1, 1]} : vector<2x40xf32> to vector<2x20xf32>
    %25 = vector.extract_strided_slice %13 {offsets = [0, 40], sizes = [2, 20], strides = [1, 1]} : vector<2x60xf32> to vector<2x20xf32>
    %26 = vector.extract_strided_slice %14 {offsets = [0, 40], sizes = [2, 20], strides = [1, 1]} : vector<2x60xf32> to vector<2x20xf32>
    %27 = arith.addf %26, %8 : vector<2x20xf32>
    %28 = arith.mulf %23, %27 : vector<2x20xf32>
    %29 = arith.addf %25, %28 : vector<2x20xf32>
    %30 = math.tanh %29 : vector<2x20xf32>
    %cst_13 = arith.constant 1.000000e+00 : f32
    %31 = vector.broadcast %cst_13 : f32 to vector<2x20xf32>
    %32 = arith.subf %31, %24 : vector<2x20xf32>
    %33 = arith.mulf %32, %30 : vector<2x20xf32>
    %34 = arith.mulf %24, %9 : vector<2x20xf32>
    %35 = arith.addf %33, %34 : vector<2x20xf32>
    %c0_14 = arith.constant 0 : index
    %c0_15 = arith.constant 0 : index
    %c0_16 = arith.constant 0 : index
    %36 = vector.load %arg9[%c0_14, %c0_15, %c0_16] : memref<16x2x20xf32, #tpu.memory_space<vmem>>, vector<1x2x20xf32>
    %37 = vector.shape_cast %36 : vector<1x2x20xf32> to vector<2x20xf32>
    %38 = vector.shape_cast %35 : vector<2x20xf32> to vector<1x2x20xf32>
    tpu.vector_store %arg9[%c0_14, %c0_15, %c0_16], %38 {strides = array<i32>} : memref<16x2x20xf32, #tpu.memory_space<vmem>>, vector<1x2x20xf32>,
    %39 = vector.extract_strided_slice %0 {offsets = [0, 1, 0], sizes = [2, 1, 4], strides = [1, 1, 1]} : vector<2x16x4xf32> to vector<2x1x4xf32>
    %40 = vector.shape_cast %39 : vector<2x1x4xf32> to vector<2x4xf32>
    %cst_17 = arith.constant dense<0.000000e+00> : vector<2x60xf32>
    %41 = tpu.matmul %40, %1, %cst_17 {dimension_numbers = #tpu.dot_dimension_numbers<[1], [0], [0], [1], [0, 0, 1, 1], [], []>} : vector<2x4xf32>, vector<4x60xf32>, vector<2x60xf32> -> vector<2x60xf32>
    %42 = arith.addf %41, %5 : vector<2x60xf32>
    %cst_18 = arith.constant dense<0.000000e+00> : vector<2x60xf32>
    %43 = tpu.matmul %35, %2, %cst_18 {dimension_numbers = #tpu.dot_dimension_numbers<[1], [0], [0], [1], [0, 0, 1, 1], [], []>} : vector<2x20xf32>, vector<20x60xf32>, vector<2x60xf32> -> vector<2x60xf32>
    %44 = vector.extract_strided_slice %42 {offsets = [0, 0], sizes = [2, 40], strides = [1, 1]} : vector<2x60xf32> to vector<2x40xf32>
    %45 = vector.extract_strided_slice %43 {offsets = [0, 0], sizes = [2, 40], strides = [1, 1]} : vector<2x60xf32> to vector<2x40xf32>
    %46 = arith.addf %44, %45 : vector<2x40xf32>
    %47 = arith.negf %46 : vector<2x40xf32>
    %48 = math.exp %47 : vector<2x40xf32>
    %cst_19 = arith.constant 1.000000e+00 : f32
    %49 = vector.broadcast %cst_19 : f32 to vector<2x40xf32>
    %50 = arith.addf %49, %48 : vector<2x40xf32>
    %51 = arith.divf %49, %50 : vector<2x40xf32>
    %52 = vector.extract_strided_slice %51 {offsets = [0, 0], sizes = [2, 20], strides = [1, 1]} : vector<2x40xf32> to vector<2x20xf32>
    %53 = vector.extract_strided_slice %51 {offsets = [0, 20], sizes = [2, 20], strides = [1, 1]} : vector<2x40xf32> to vector<2x20xf32>
    %54 = vector.extract_strided_slice %42 {offsets = [0, 40], sizes = [2, 20], strides = [1, 1]} : vector<2x60xf32> to vector<2x20xf32>
    %55 = vector.extract_strided_slice %43 {offsets = [0, 40], sizes = [2, 20], strides = [1, 1]} : vector<2x60xf32> to vector<2x20xf32>
    %56 = arith.addf %55, %8 : vector<2x20xf32>
    %57 = arith.mulf %52, %56 : vector<2x20xf32>
    %58 = arith.addf %54, %57 : vector<2x20xf32>
    %59 = math.tanh %58 : vector<2x20xf32>
    %cst_20 = arith.constant 1.000000e+00 : f32
    %60 = vector.broadcast %cst_20 : f32 to vector<2x20xf32>
    %61 = arith.subf %60, %53 : vector<2x20xf32>
    %62 = arith.mulf %61, %59 : vector<2x20xf32>
    %63 = arith.mulf %53, %35 : vector<2x20xf32>
    %64 = arith.addf %62, %63 : vector<2x20xf32>
    %c1 = arith.constant 1 : index
    %c0_21 = arith.constant 0 : index
    %c0_22 = arith.constant 0 : index
    %65 = vector.load %arg9[%c1, %c0_21, %c0_22] : memref<16x2x20xf32, #tpu.memory_space<vmem>>, vector<1x2x20xf32>
    %66 = vector.shape_cast %65 : vector<1x2x20xf32> to vector<2x20xf32>
    %67 = vector.shape_cast %64 : vector<2x20xf32> to vector<1x2x20xf32>
    tpu.vector_store %arg9[%c1, %c0_21, %c0_22], %67 {strides = array<i32>} : memref<16x2x20xf32, #tpu.memory_space<vmem>>, vector<1x2x20xf32>,
    %68 = vector.extract_strided_slice %0 {offsets = [0, 2, 0], sizes = [2, 1, 4], strides = [1, 1, 1]} : vector<2x16x4xf32> to vector<2x1x4xf32>
    %69 = vector.shape_cast %68 : vector<2x1x4xf32> to vector<2x4xf32>
    %cst_23 = arith.constant dense<0.000000e+00> : vector<2x60xf32>
    %70 = tpu.matmul %69, %1, %cst_23 {dimension_numbers = #tpu.dot_dimension_numbers<[1], [0], [0], [1], [0, 0, 1, 1], [], []>} : vector<2x4xf32>, vector<4x60xf32>, vector<2x60xf32> -> vector<2x60xf32>
    %71 = arith.addf %70, %5 : vector<2x60xf32>
    %cst_24 = arith.constant dense<0.000000e+00> : vector<2x60xf32>
    %72 = tpu.matmul %64, %2, %cst_24 {dimension_numbers = #tpu.dot_dimension_numbers<[1], [0], [0], [1], [0, 0, 1, 1], [], []>} : vector<2x20xf32>, vector<20x60xf32>, vector<2x60xf32> -> vector<2x60xf32>
    %73 = vector.extract_strided_slice %71 {offsets = [0, 0], sizes = [2, 40], strides = [1, 1]} : vector<2x60xf32> to vector<2x40xf32>
    %74 = vector.extract_strided_slice %72 {offsets = [0, 0], sizes = [2, 40], strides = [1, 1]} : vector<2x60xf32> to vector<2x40xf32>
    %75 = arith.addf %73, %74 : vector<2x40xf32>
    %76 = arith.negf %75 : vector<2x40xf32>
    %77 = math.exp %76 : vector<2x40xf32>
    %cst_25 = arith.constant 1.000000e+00 : f32
    %78 = vector.broadcast %cst_25 : f32 to vector<2x40xf32>
    %79 = arith.addf %78, %77 : vector<2x40xf32>
    %80 = arith.divf %78, %79 : vector<2x40xf32>
    %81 = vector.extract_strided_slice %80 {offsets = [0, 0], sizes = [2, 20], strides = [1, 1]} : vector<2x40xf32> to vector<2x20xf32>
    %82 = vector.extract_strided_slice %80 {offsets = [0, 20], sizes = [2, 20], strides = [1, 1]} : vector<2x40xf32> to vector<2x20xf32>
    %83 = vector.extract_strided_slice %71 {offsets = [0, 40], sizes = [2, 20], strides = [1, 1]} : vector<2x60xf32> to vector<2x20xf32>
    %84 = vector.extract_strided_slice %72 {offsets = [0, 40], sizes = [2, 20], strides = [1, 1]} : vector<2x60xf32> to vector<2x20xf32>
    %85 = arith.addf %84, %8 : vector<2x20xf32>
    %86 = arith.mulf %81, %85 : vector<2x20xf32>
    %87 = arith.addf %83, %86 : vector<2x20xf32>
    %88 = math.tanh %87 : vector<2x20xf32>
    %cst_26 = arith.constant 1.000000e+00 : f32
    %89 = vector.broadcast %cst_26 : f32 to vector<2x20xf32>
    %90 = arith.subf %89, %82 : vector<2x20xf32>
    %91 = arith.mulf %90, %88 : vector<2x20xf32>
    %92 = arith.mulf %82, %64 : vector<2x20xf32>
    %93 = arith.addf %91, %92 : vector<2x20xf32>
    %c2 = arith.constant 2 : index
    %c0_27 = arith.constant 0 : index
    %c0_28 = arith.constant 0 : index
    %94 = vector.load %arg9[%c2, %c0_27, %c0_28] : memref<16x2x20xf32, #tpu.memory_space<vmem>>, vector<1x2x20xf32>
    %95 = vector.shape_cast %94 : vector<1x2x20xf32> to vector<2x20xf32>
    %96 = vector.shape_cast %93 : vector<2x20xf32> to vector<1x2x20xf32>
    tpu.vector_store %arg9[%c2, %c0_27, %c0_28], %96 {strides = array<i32>} : memref<16x2x20xf32, #tpu.memory_space<vmem>>, vector<1x2x20xf32>,
    %97 = vector.extract_strided_slice %0 {offsets = [0, 3, 0], sizes = [2, 1, 4], strides = [1, 1, 1]} : vector<2x16x4xf32> to vector<2x1x4xf32>
    %98 = vector.shape_cast %97 : vector<2x1x4xf32> to vector<2x4xf32>
    %cst_29 = arith.constant dense<0.000000e+00> : vector<2x60xf32>
    %99 = tpu.matmul %98, %1, %cst_29 {dimension_numbers = #tpu.dot_dimension_numbers<[1], [0], [0], [1], [0, 0, 1, 1], [], []>} : vector<2x4xf32>, vector<4x60xf32>, vector<2x60xf32> -> vector<2x60xf32>
    %100 = arith.addf %99, %5 : vector<2x60xf32>
    %cst_30 = arith.constant dense<0.000000e+00> : vector<2x60xf32>
    %101 = tpu.matmul %93, %2, %cst_30 {dimension_numbers = #tpu.dot_dimension_numbers<[1], [0], [0], [1], [0, 0, 1, 1], [], []>} : vector<2x20xf32>, vector<20x60xf32>, vector<2x60xf32> -> vector<2x60xf32>
    %102 = vector.extract_strided_slice %100 {offsets = [0, 0], sizes = [2, 40], strides = [1, 1]} : vector<2x60xf32> to vector<2x40xf32>
    %103 = vector.extract_strided_slice %101 {offsets = [0, 0], sizes = [2, 40], strides = [1, 1]} : vector<2x60xf32> to vector<2x40xf32>
    %104 = arith.addf %102, %103 : vector<2x40xf32>
    %105 = arith.negf %104 : vector<2x40xf32>
    %106 = math.exp %105 : vector<2x40xf32>
    %cst_31 = arith.constant 1.000000e+00 : f32
    %107 = vector.broadcast %cst_31 : f32 to vector<2x40xf32>
    %108 = arith.addf %107, %106 : vector<2x40xf32>
    %109 = arith.divf %107, %108 : vector<2x40xf32>
    %110 = vector.extract_strided_slice %109 {offsets = [0, 0], sizes = [2, 20], strides = [1, 1]} : vector<2x40xf32> to vector<2x20xf32>
    %111 = vector.extract_strided_slice %109 {offsets = [0, 20], sizes = [2, 20], strides = [1, 1]} : vector<2x40xf32> to vector<2x20xf32>
    %112 = vector.extract_strided_slice %100 {offsets = [0, 40], sizes = [2, 20], strides = [1, 1]} : vector<2x60xf32> to vector<2x20xf32>
    %113 = vector.extract_strided_slice %101 {offsets = [0, 40], sizes = [2, 20], strides = [1, 1]} : vector<2x60xf32> to vector<2x20xf32>
    %114 = arith.addf %113, %8 : vector<2x20xf32>
    %115 = arith.mulf %110, %114 : vector<2x20xf32>
    %116 = arith.addf %112, %115 : vector<2x20xf32>
    %117 = math.tanh %116 : vector<2x20xf32>
    %cst_32 = arith.constant 1.000000e+00 : f32
    %118 = vector.broadcast %cst_32 : f32 to vector<2x20xf32>
    %119 = arith.subf %118, %111 : vector<2x20xf32>
    %120 = arith.mulf %119, %117 : vector<2x20xf32>
    %121 = arith.mulf %111, %93 : vector<2x20xf32>
    %122 = arith.addf %120, %121 : vector<2x20xf32>
    %c3 = arith.constant 3 : index
    %c0_33 = arith.constant 0 : index
    %c0_34 = arith.constant 0 : index
    %123 = vector.load %arg9[%c3, %c0_33, %c0_34] : memref<16x2x20xf32, #tpu.memory_space<vmem>>, vector<1x2x20xf32>
    %124 = vector.shape_cast %123 : vector<1x2x20xf32> to vector<2x20xf32>
    %125 = vector.shape_cast %122 : vector<2x20xf32> to vector<1x2x20xf32>
    tpu.vector_store %arg9[%c3, %c0_33, %c0_34], %125 {strides = array<i32>} : memref<16x2x20xf32, #tpu.memory_space<vmem>>, vector<1x2x20xf32>,
    %126 = vector.extract_strided_slice %0 {offsets = [0, 4, 0], sizes = [2, 1, 4], strides = [1, 1, 1]} : vector<2x16x4xf32> to vector<2x1x4xf32>
    %127 = vector.shape_cast %126 : vector<2x1x4xf32> to vector<2x4xf32>
    %cst_35 = arith.constant dense<0.000000e+00> : vector<2x60xf32>
    %128 = tpu.matmul %127, %1, %cst_35 {dimension_numbers = #tpu.dot_dimension_numbers<[1], [0], [0], [1], [0, 0, 1, 1], [], []>} : vector<2x4xf32>, vector<4x60xf32>, vector<2x60xf32> -> vector<2x60xf32>
    %129 = arith.addf %128, %5 : vector<2x60xf32>
    %cst_36 = arith.constant dense<0.000000e+00> : vector<2x60xf32>
    %130 = tpu.matmul %122, %2, %cst_36 {dimension_numbers = #tpu.dot_dimension_numbers<[1], [0], [0], [1], [0, 0, 1, 1], [], []>} : vector<2x20xf32>, vector<20x60xf32>, vector<2x60xf32> -> vector<2x60xf32>
    %131 = vector.extract_strided_slice %129 {offsets = [0, 0], sizes = [2, 40], strides = [1, 1]} : vector<2x60xf32> to vector<2x40xf32>
    %132 = vector.extract_strided_slice %130 {offsets = [0, 0], sizes = [2, 40], strides = [1, 1]} : vector<2x60xf32> to vector<2x40xf32>
    %133 = arith.addf %131, %132 : vector<2x40xf32>
    %134 = arith.negf %133 : vector<2x40xf32>
    %135 = math.exp %134 : vector<2x40xf32>
    %cst_37 = arith.constant 1.000000e+00 : f32
    %136 = vector.broadcast %cst_37 : f32 to vector<2x40xf32>
    %137 = arith.addf %136, %135 : vector<2x40xf32>
    %138 = arith.divf %136, %137 : vector<2x40xf32>
    %139 = vector.extract_strided_slice %138 {offsets = [0, 0], sizes = [2, 20], strides = [1, 1]} : vector<2x40xf32> to vector<2x20xf32>
    %140 = vector.extract_strided_slice %138 {offsets = [0, 20], sizes = [2, 20], strides = [1, 1]} : vector<2x40xf32> to vector<2x20xf32>
    %141 = vector.extract_strided_slice %129 {offsets = [0, 40], sizes = [2, 20], strides = [1, 1]} : vector<2x60xf32> to vector<2x20xf32>
    %142 = vector.extract_strided_slice %130 {offsets = [0, 40], sizes = [2, 20], strides = [1, 1]} : vector<2x60xf32> to vector<2x20xf32>
    %143 = arith.addf %142, %8 : vector<2x20xf32>
    %144 = arith.mulf %139, %143 : vector<2x20xf32>
    %145 = arith.addf %141, %144 : vector<2x20xf32>
    %146 = math.tanh %145 : vector<2x20xf32>
    %cst_38 = arith.constant 1.000000e+00 : f32
    %147 = vector.broadcast %cst_38 : f32 to vector<2x20xf32>
    %148 = arith.subf %147, %140 : vector<2x20xf32>
    %149 = arith.mulf %148, %146 : vector<2x20xf32>
    %150 = arith.mulf %140, %122 : vector<2x20xf32>
    %151 = arith.addf %149, %150 : vector<2x20xf32>
    %c4 = arith.constant 4 : index
    %c0_39 = arith.constant 0 : index
    %c0_40 = arith.constant 0 : index
    %152 = vector.load %arg9[%c4, %c0_39, %c0_40] : memref<16x2x20xf32, #tpu.memory_space<vmem>>, vector<1x2x20xf32>
    %153 = vector.shape_cast %152 : vector<1x2x20xf32> to vector<2x20xf32>
    %154 = vector.shape_cast %151 : vector<2x20xf32> to vector<1x2x20xf32>
    tpu.vector_store %arg9[%c4, %c0_39, %c0_40], %154 {strides = array<i32>} : memref<16x2x20xf32, #tpu.memory_space<vmem>>, vector<1x2x20xf32>,
    %155 = vector.extract_strided_slice %0 {offsets = [0, 5, 0], sizes = [2, 1, 4], strides = [1, 1, 1]} : vector<2x16x4xf32> to vector<2x1x4xf32>
    %156 = vector.shape_cast %155 : vector<2x1x4xf32> to vector<2x4xf32>
    %cst_41 = arith.constant dense<0.000000e+00> : vector<2x60xf32>
    %157 = tpu.matmul %156, %1, %cst_41 {dimension_numbers = #tpu.dot_dimension_numbers<[1], [0], [0], [1], [0, 0, 1, 1], [], []>} : vector<2x4xf32>, vector<4x60xf32>, vector<2x60xf32> -> vector<2x60xf32>
    %158 = arith.addf %157, %5 : vector<2x60xf32>
    %cst_42 = arith.constant dense<0.000000e+00> : vector<2x60xf32>
    %159 = tpu.matmul %151, %2, %cst_42 {dimension_numbers = #tpu.dot_dimension_numbers<[1], [0], [0], [1], [0, 0, 1, 1], [], []>} : vector<2x20xf32>, vector<20x60xf32>, vector<2x60xf32> -> vector<2x60xf32>
    %160 = vector.extract_strided_slice %158 {offsets = [0, 0], sizes = [2, 40], strides = [1, 1]} : vector<2x60xf32> to vector<2x40xf32>
    %161 = vector.extract_strided_slice %159 {offsets = [0, 0], sizes = [2, 40], strides = [1, 1]} : vector<2x60xf32> to vector<2x40xf32>
    %162 = arith.addf %160, %161 : vector<2x40xf32>
    %163 = arith.negf %162 : vector<2x40xf32>
    %164 = math.exp %163 : vector<2x40xf32>
    %cst_43 = arith.constant 1.000000e+00 : f32
    %165 = vector.broadcast %cst_43 : f32 to vector<2x40xf32>
    %166 = arith.addf %165, %164 : vector<2x40xf32>
    %167 = arith.divf %165, %166 : vector<2x40xf32>
    %168 = vector.extract_strided_slice %167 {offsets = [0, 0], sizes = [2, 20], strides = [1, 1]} : vector<2x40xf32> to vector<2x20xf32>
    %169 = vector.extract_strided_slice %167 {offsets = [0, 20], sizes = [2, 20], strides = [1, 1]} : vector<2x40xf32> to vector<2x20xf32>
    %170 = vector.extract_strided_slice %158 {offsets = [0, 40], sizes = [2, 20], strides = [1, 1]} : vector<2x60xf32> to vector<2x20xf32>
    %171 = vector.extract_strided_slice %159 {offsets = [0, 40], sizes = [2, 20], strides = [1, 1]} : vector<2x60xf32> to vector<2x20xf32>
    %172 = arith.addf %171, %8 : vector<2x20xf32>
    %173 = arith.mulf %168, %172 : vector<2x20xf32>
    %174 = arith.addf %170, %173 : vector<2x20xf32>
    %175 = math.tanh %174 : vector<2x20xf32>
    %cst_44 = arith.constant 1.000000e+00 : f32
    %176 = vector.broadcast %cst_44 : f32 to vector<2x20xf32>
    %177 = arith.subf %176, %169 : vector<2x20xf32>
    %178 = arith.mulf %177, %175 : vector<2x20xf32>
    %179 = arith.mulf %169, %151 : vector<2x20xf32>
    %180 = arith.addf %178, %179 : vector<2x20xf32>
    %c5 = arith.constant 5 : index
    %c0_45 = arith.constant 0 : index
    %c0_46 = arith.constant 0 : index
    %181 = vector.load %arg9[%c5, %c0_45, %c0_46] : memref<16x2x20xf32, #tpu.memory_space<vmem>>, vector<1x2x20xf32>
    %182 = vector.shape_cast %181 : vector<1x2x20xf32> to vector<2x20xf32>
    %183 = vector.shape_cast %180 : vector<2x20xf32> to vector<1x2x20xf32>
    tpu.vector_store %arg9[%c5, %c0_45, %c0_46], %183 {strides = array<i32>} : memref<16x2x20xf32, #tpu.memory_space<vmem>>, vector<1x2x20xf32>,
    %184 = vector.extract_strided_slice %0 {offsets = [0, 6, 0], sizes = [2, 1, 4], strides = [1, 1, 1]} : vector<2x16x4xf32> to vector<2x1x4xf32>
    %185 = vector.shape_cast %184 : vector<2x1x4xf32> to vector<2x4xf32>
    %cst_47 = arith.constant dense<0.000000e+00> : vector<2x60xf32>
    %186 = tpu.matmul %185, %1, %cst_47 {dimension_numbers = #tpu.dot_dimension_numbers<[1], [0], [0], [1], [0, 0, 1, 1], [], []>} : vector<2x4xf32>, vector<4x60xf32>, vector<2x60xf32> -> vector<2x60xf32>
    %187 = arith.addf %186, %5 : vector<2x60xf32>
    %cst_48 = arith.constant dense<0.000000e+00> : vector<2x60xf32>
    %188 = tpu.matmul %180, %2, %cst_48 {dimension_numbers = #tpu.dot_dimension_numbers<[1], [0], [0], [1], [0, 0, 1, 1], [], []>} : vector<2x20xf32>, vector<20x60xf32>, vector<2x60xf32> -> vector<2x60xf32>
    %189 = vector.extract_strided_slice %187 {offsets = [0, 0], sizes = [2, 40], strides = [1, 1]} : vector<2x60xf32> to vector<2x40xf32>
    %190 = vector.extract_strided_slice %188 {offsets = [0, 0], sizes = [2, 40], strides = [1, 1]} : vector<2x60xf32> to vector<2x40xf32>
    %191 = arith.addf %189, %190 : vector<2x40xf32>
    %192 = arith.negf %191 : vector<2x40xf32>
    %193 = math.exp %192 : vector<2x40xf32>
    %cst_49 = arith.constant 1.000000e+00 : f32
    %194 = vector.broadcast %cst_49 : f32 to vector<2x40xf32>
    %195 = arith.addf %194, %193 : vector<2x40xf32>
    %196 = arith.divf %194, %195 : vector<2x40xf32>
    %197 = vector.extract_strided_slice %196 {offsets = [0, 0], sizes = [2, 20], strides = [1, 1]} : vector<2x40xf32> to vector<2x20xf32>
    %198 = vector.extract_strided_slice %196 {offsets = [0, 20], sizes = [2, 20], strides = [1, 1]} : vector<2x40xf32> to vector<2x20xf32>
    %199 = vector.extract_strided_slice %187 {offsets = [0, 40], sizes = [2, 20], strides = [1, 1]} : vector<2x60xf32> to vector<2x20xf32>
    %200 = vector.extract_strided_slice %188 {offsets = [0, 40], sizes = [2, 20], strides = [1, 1]} : vector<2x60xf32> to vector<2x20xf32>
    %201 = arith.addf %200, %8 : vector<2x20xf32>
    %202 = arith.mulf %197, %201 : vector<2x20xf32>
    %203 = arith.addf %199, %202 : vector<2x20xf32>
    %204 = math.tanh %203 : vector<2x20xf32>
    %cst_50 = arith.constant 1.000000e+00 : f32
    %205 = vector.broadcast %cst_50 : f32 to vector<2x20xf32>
    %206 = arith.subf %205, %198 : vector<2x20xf32>
    %207 = arith.mulf %206, %204 : vector<2x20xf32>
    %208 = arith.mulf %198, %180 : vector<2x20xf32>
    %209 = arith.addf %207, %208 : vector<2x20xf32>
    %c6 = arith.constant 6 : index
    %c0_51 = arith.constant 0 : index
    %c0_52 = arith.constant 0 : index
    %210 = vector.load %arg9[%c6, %c0_51, %c0_52] : memref<16x2x20xf32, #tpu.memory_space<vmem>>, vector<1x2x20xf32>
    %211 = vector.shape_cast %210 : vector<1x2x20xf32> to vector<2x20xf32>
    %212 = vector.shape_cast %209 : vector<2x20xf32> to vector<1x2x20xf32>
    tpu.vector_store %arg9[%c6, %c0_51, %c0_52], %212 {strides = array<i32>} : memref<16x2x20xf32, #tpu.memory_space<vmem>>, vector<1x2x20xf32>,
    %213 = vector.extract_strided_slice %0 {offsets = [0, 7, 0], sizes = [2, 1, 4], strides = [1, 1, 1]} : vector<2x16x4xf32> to vector<2x1x4xf32>
    %214 = vector.shape_cast %213 : vector<2x1x4xf32> to vector<2x4xf32>
    %cst_53 = arith.constant dense<0.000000e+00> : vector<2x60xf32>
    %215 = tpu.matmul %214, %1, %cst_53 {dimension_numbers = #tpu.dot_dimension_numbers<[1], [0], [0], [1], [0, 0, 1, 1], [], []>} : vector<2x4xf32>, vector<4x60xf32>, vector<2x60xf32> -> vector<2x60xf32>
    %216 = arith.addf %215, %5 : vector<2x60xf32>
    %cst_54 = arith.constant dense<0.000000e+00> : vector<2x60xf32>
    %217 = tpu.matmul %209, %2, %cst_54 {dimension_numbers = #tpu.dot_dimension_numbers<[1], [0], [0], [1], [0, 0, 1, 1], [], []>} : vector<2x20xf32>, vector<20x60xf32>, vector<2x60xf32> -> vector<2x60xf32>
    %218 = vector.extract_strided_slice %216 {offsets = [0, 0], sizes = [2, 40], strides = [1, 1]} : vector<2x60xf32> to vector<2x40xf32>
    %219 = vector.extract_strided_slice %217 {offsets = [0, 0], sizes = [2, 40], strides = [1, 1]} : vector<2x60xf32> to vector<2x40xf32>
    %220 = arith.addf %218, %219 : vector<2x40xf32>
    %221 = arith.negf %220 : vector<2x40xf32>
    %222 = math.exp %221 : vector<2x40xf32>
    %cst_55 = arith.constant 1.000000e+00 : f32
    %223 = vector.broadcast %cst_55 : f32 to vector<2x40xf32>
    %224 = arith.addf %223, %222 : vector<2x40xf32>
    %225 = arith.divf %223, %224 : vector<2x40xf32>
    %226 = vector.extract_strided_slice %225 {offsets = [0, 0], sizes = [2, 20], strides = [1, 1]} : vector<2x40xf32> to vector<2x20xf32>
    %227 = vector.extract_strided_slice %225 {offsets = [0, 20], sizes = [2, 20], strides = [1, 1]} : vector<2x40xf32> to vector<2x20xf32>
    %228 = vector.extract_strided_slice %216 {offsets = [0, 40], sizes = [2, 20], strides = [1, 1]} : vector<2x60xf32> to vector<2x20xf32>
    %229 = vector.extract_strided_slice %217 {offsets = [0, 40], sizes = [2, 20], strides = [1, 1]} : vector<2x60xf32> to vector<2x20xf32>
    %230 = arith.addf %229, %8 : vector<2x20xf32>
    %231 = arith.mulf %226, %230 : vector<2x20xf32>
    %232 = arith.addf %228, %231 : vector<2x20xf32>
    %233 = math.tanh %232 : vector<2x20xf32>
    %cst_56 = arith.constant 1.000000e+00 : f32
    %234 = vector.broadcast %cst_56 : f32 to vector<2x20xf32>
    %235 = arith.subf %234, %227 : vector<2x20xf32>
    %236 = arith.mulf %235, %233 : vector<2x20xf32>
    %237 = arith.mulf %227, %209 : vector<2x20xf32>
    %238 = arith.addf %236, %237 : vector<2x20xf32>
    %c7 = arith.constant 7 : index
    %c0_57 = arith.constant 0 : index
    %c0_58 = arith.constant 0 : index
    %239 = vector.load %arg9[%c7, %c0_57, %c0_58] : memref<16x2x20xf32, #tpu.memory_space<vmem>>, vector<1x2x20xf32>
    %240 = vector.shape_cast %239 : vector<1x2x20xf32> to vector<2x20xf32>
    %241 = vector.shape_cast %238 : vector<2x20xf32> to vector<1x2x20xf32>
    tpu.vector_store %arg9[%c7, %c0_57, %c0_58], %241 {strides = array<i32>} : memref<16x2x20xf32, #tpu.memory_space<vmem>>, vector<1x2x20xf32>,
    %242 = vector.extract_strided_slice %0 {offsets = [0, 8, 0], sizes = [2, 1, 4], strides = [1, 1, 1]} : vector<2x16x4xf32> to vector<2x1x4xf32>
    %243 = vector.shape_cast %242 : vector<2x1x4xf32> to vector<2x4xf32>
    %cst_59 = arith.constant dense<0.000000e+00> : vector<2x60xf32>
    %244 = tpu.matmul %243, %1, %cst_59 {dimension_numbers = #tpu.dot_dimension_numbers<[1], [0], [0], [1], [0, 0, 1, 1], [], []>} : vector<2x4xf32>, vector<4x60xf32>, vector<2x60xf32> -> vector<2x60xf32>
    %245 = arith.addf %244, %5 : vector<2x60xf32>
    %cst_60 = arith.constant dense<0.000000e+00> : vector<2x60xf32>
    %246 = tpu.matmul %238, %2, %cst_60 {dimension_numbers = #tpu.dot_dimension_numbers<[1], [0], [0], [1], [0, 0, 1, 1], [], []>} : vector<2x20xf32>, vector<20x60xf32>, vector<2x60xf32> -> vector<2x60xf32>
    %247 = vector.extract_strided_slice %245 {offsets = [0, 0], sizes = [2, 40], strides = [1, 1]} : vector<2x60xf32> to vector<2x40xf32>
    %248 = vector.extract_strided_slice %246 {offsets = [0, 0], sizes = [2, 40], strides = [1, 1]} : vector<2x60xf32> to vector<2x40xf32>
    %249 = arith.addf %247, %248 : vector<2x40xf32>
    %250 = arith.negf %249 : vector<2x40xf32>
    %251 = math.exp %250 : vector<2x40xf32>
    %cst_61 = arith.constant 1.000000e+00 : f32
    %252 = vector.broadcast %cst_61 : f32 to vector<2x40xf32>
    %253 = arith.addf %252, %251 : vector<2x40xf32>
    %254 = arith.divf %252, %253 : vector<2x40xf32>
    %255 = vector.extract_strided_slice %254 {offsets = [0, 0], sizes = [2, 20], strides = [1, 1]} : vector<2x40xf32> to vector<2x20xf32>
    %256 = vector.extract_strided_slice %254 {offsets = [0, 20], sizes = [2, 20], strides = [1, 1]} : vector<2x40xf32> to vector<2x20xf32>
    %257 = vector.extract_strided_slice %245 {offsets = [0, 40], sizes = [2, 20], strides = [1, 1]} : vector<2x60xf32> to vector<2x20xf32>
    %258 = vector.extract_strided_slice %246 {offsets = [0, 40], sizes = [2, 20], strides = [1, 1]} : vector<2x60xf32> to vector<2x20xf32>
    %259 = arith.addf %258, %8 : vector<2x20xf32>
    %260 = arith.mulf %255, %259 : vector<2x20xf32>
    %261 = arith.addf %257, %260 : vector<2x20xf32>
    %262 = math.tanh %261 : vector<2x20xf32>
    %cst_62 = arith.constant 1.000000e+00 : f32
    %263 = vector.broadcast %cst_62 : f32 to vector<2x20xf32>
    %264 = arith.subf %263, %256 : vector<2x20xf32>
    %265 = arith.mulf %264, %262 : vector<2x20xf32>
    %266 = arith.mulf %256, %238 : vector<2x20xf32>
    %267 = arith.addf %265, %266 : vector<2x20xf32>
    %c8 = arith.constant 8 : index
    %c0_63 = arith.constant 0 : index
    %c0_64 = arith.constant 0 : index
    %268 = vector.load %arg9[%c8, %c0_63, %c0_64] : memref<16x2x20xf32, #tpu.memory_space<vmem>>, vector<1x2x20xf32>
    %269 = vector.shape_cast %268 : vector<1x2x20xf32> to vector<2x20xf32>
    %270 = vector.shape_cast %267 : vector<2x20xf32> to vector<1x2x20xf32>
    tpu.vector_store %arg9[%c8, %c0_63, %c0_64], %270 {strides = array<i32>} : memref<16x2x20xf32, #tpu.memory_space<vmem>>, vector<1x2x20xf32>,
    %271 = vector.extract_strided_slice %0 {offsets = [0, 9, 0], sizes = [2, 1, 4], strides = [1, 1, 1]} : vector<2x16x4xf32> to vector<2x1x4xf32>
    %272 = vector.shape_cast %271 : vector<2x1x4xf32> to vector<2x4xf32>
    %cst_65 = arith.constant dense<0.000000e+00> : vector<2x60xf32>
    %273 = tpu.matmul %272, %1, %cst_65 {dimension_numbers = #tpu.dot_dimension_numbers<[1], [0], [0], [1], [0, 0, 1, 1], [], []>} : vector<2x4xf32>, vector<4x60xf32>, vector<2x60xf32> -> vector<2x60xf32>
    %274 = arith.addf %273, %5 : vector<2x60xf32>
    %cst_66 = arith.constant dense<0.000000e+00> : vector<2x60xf32>
    %275 = tpu.matmul %267, %2, %cst_66 {dimension_numbers = #tpu.dot_dimension_numbers<[1], [0], [0], [1], [0, 0, 1, 1], [], []>} : vector<2x20xf32>, vector<20x60xf32>, vector<2x60xf32> -> vector<2x60xf32>
    %276 = vector.extract_strided_slice %274 {offsets = [0, 0], sizes = [2, 40], strides = [1, 1]} : vector<2x60xf32> to vector<2x40xf32>
    %277 = vector.extract_strided_slice %275 {offsets = [0, 0], sizes = [2, 40], strides = [1, 1]} : vector<2x60xf32> to vector<2x40xf32>
    %278 = arith.addf %276, %277 : vector<2x40xf32>
    %279 = arith.negf %278 : vector<2x40xf32>
    %280 = math.exp %279 : vector<2x40xf32>
    %cst_67 = arith.constant 1.000000e+00 : f32
    %281 = vector.broadcast %cst_67 : f32 to vector<2x40xf32>
    %282 = arith.addf %281, %280 : vector<2x40xf32>
    %283 = arith.divf %281, %282 : vector<2x40xf32>
    %284 = vector.extract_strided_slice %283 {offsets = [0, 0], sizes = [2, 20], strides = [1, 1]} : vector<2x40xf32> to vector<2x20xf32>
    %285 = vector.extract_strided_slice %283 {offsets = [0, 20], sizes = [2, 20], strides = [1, 1]} : vector<2x40xf32> to vector<2x20xf32>
    %286 = vector.extract_strided_slice %274 {offsets = [0, 40], sizes = [2, 20], strides = [1, 1]} : vector<2x60xf32> to vector<2x20xf32>
    %287 = vector.extract_strided_slice %275 {offsets = [0, 40], sizes = [2, 20], strides = [1, 1]} : vector<2x60xf32> to vector<2x20xf32>
    %288 = arith.addf %287, %8 : vector<2x20xf32>
    %289 = arith.mulf %284, %288 : vector<2x20xf32>
    %290 = arith.addf %286, %289 : vector<2x20xf32>
    %291 = math.tanh %290 : vector<2x20xf32>
    %cst_68 = arith.constant 1.000000e+00 : f32
    %292 = vector.broadcast %cst_68 : f32 to vector<2x20xf32>
    %293 = arith.subf %292, %285 : vector<2x20xf32>
    %294 = arith.mulf %293, %291 : vector<2x20xf32>
    %295 = arith.mulf %285, %267 : vector<2x20xf32>
    %296 = arith.addf %294, %295 : vector<2x20xf32>
    %c9 = arith.constant 9 : index
    %c0_69 = arith.constant 0 : index
    %c0_70 = arith.constant 0 : index
    %297 = vector.load %arg9[%c9, %c0_69, %c0_70] : memref<16x2x20xf32, #tpu.memory_space<vmem>>, vector<1x2x20xf32>
    %298 = vector.shape_cast %297 : vector<1x2x20xf32> to vector<2x20xf32>
    %299 = vector.shape_cast %296 : vector<2x20xf32> to vector<1x2x20xf32>
    tpu.vector_store %arg9[%c9, %c0_69, %c0_70], %299 {strides = array<i32>} : memref<16x2x20xf32, #tpu.memory_space<vmem>>, vector<1x2x20xf32>,
    %300 = vector.extract_strided_slice %0 {offsets = [0, 10, 0], sizes = [2, 1, 4], strides = [1, 1, 1]} : vector<2x16x4xf32> to vector<2x1x4xf32>
    %301 = vector.shape_cast %300 : vector<2x1x4xf32> to vector<2x4xf32>
    %cst_71 = arith.constant dense<0.000000e+00> : vector<2x60xf32>
    %302 = tpu.matmul %301, %1, %cst_71 {dimension_numbers = #tpu.dot_dimension_numbers<[1], [0], [0], [1], [0, 0, 1, 1], [], []>} : vector<2x4xf32>, vector<4x60xf32>, vector<2x60xf32> -> vector<2x60xf32>
    %303 = arith.addf %302, %5 : vector<2x60xf32>
    %cst_72 = arith.constant dense<0.000000e+00> : vector<2x60xf32>
    %304 = tpu.matmul %296, %2, %cst_72 {dimension_numbers = #tpu.dot_dimension_numbers<[1], [0], [0], [1], [0, 0, 1, 1], [], []>} : vector<2x20xf32>, vector<20x60xf32>, vector<2x60xf32> -> vector<2x60xf32>
    %305 = vector.extract_strided_slice %303 {offsets = [0, 0], sizes = [2, 40], strides = [1, 1]} : vector<2x60xf32> to vector<2x40xf32>
    %306 = vector.extract_strided_slice %304 {offsets = [0, 0], sizes = [2, 40], strides = [1, 1]} : vector<2x60xf32> to vector<2x40xf32>
    %307 = arith.addf %305, %306 : vector<2x40xf32>
    %308 = arith.negf %307 : vector<2x40xf32>
    %309 = math.exp %308 : vector<2x40xf32>
    %cst_73 = arith.constant 1.000000e+00 : f32
    %310 = vector.broadcast %cst_73 : f32 to vector<2x40xf32>
    %311 = arith.addf %310, %309 : vector<2x40xf32>
    %312 = arith.divf %310, %311 : vector<2x40xf32>
    %313 = vector.extract_strided_slice %312 {offsets = [0, 0], sizes = [2, 20], strides = [1, 1]} : vector<2x40xf32> to vector<2x20xf32>
    %314 = vector.extract_strided_slice %312 {offsets = [0, 20], sizes = [2, 20], strides = [1, 1]} : vector<2x40xf32> to vector<2x20xf32>
    %315 = vector.extract_strided_slice %303 {offsets = [0, 40], sizes = [2, 20], strides = [1, 1]} : vector<2x60xf32> to vector<2x20xf32>
    %316 = vector.extract_strided_slice %304 {offsets = [0, 40], sizes = [2, 20], strides = [1, 1]} : vector<2x60xf32> to vector<2x20xf32>
    %317 = arith.addf %316, %8 : vector<2x20xf32>
    %318 = arith.mulf %313, %317 : vector<2x20xf32>
    %319 = arith.addf %315, %318 : vector<2x20xf32>
    %320 = math.tanh %319 : vector<2x20xf32>
    %cst_74 = arith.constant 1.000000e+00 : f32
    %321 = vector.broadcast %cst_74 : f32 to vector<2x20xf32>
    %322 = arith.subf %321, %314 : vector<2x20xf32>
    %323 = arith.mulf %322, %320 : vector<2x20xf32>
    %324 = arith.mulf %314, %296 : vector<2x20xf32>
    %325 = arith.addf %323, %324 : vector<2x20xf32>
    %c10 = arith.constant 10 : index
    %c0_75 = arith.constant 0 : index
    %c0_76 = arith.constant 0 : index
    %326 = vector.load %arg9[%c10, %c0_75, %c0_76] : memref<16x2x20xf32, #tpu.memory_space<vmem>>, vector<1x2x20xf32>
    %327 = vector.shape_cast %326 : vector<1x2x20xf32> to vector<2x20xf32>
    %328 = vector.shape_cast %325 : vector<2x20xf32> to vector<1x2x20xf32>
    tpu.vector_store %arg9[%c10, %c0_75, %c0_76], %328 {strides = array<i32>} : memref<16x2x20xf32, #tpu.memory_space<vmem>>, vector<1x2x20xf32>,
    %329 = vector.extract_strided_slice %0 {offsets = [0, 11, 0], sizes = [2, 1, 4], strides = [1, 1, 1]} : vector<2x16x4xf32> to vector<2x1x4xf32>
    %330 = vector.shape_cast %329 : vector<2x1x4xf32> to vector<2x4xf32>
    %cst_77 = arith.constant dense<0.000000e+00> : vector<2x60xf32>
    %331 = tpu.matmul %330, %1, %cst_77 {dimension_numbers = #tpu.dot_dimension_numbers<[1], [0], [0], [1], [0, 0, 1, 1], [], []>} : vector<2x4xf32>, vector<4x60xf32>, vector<2x60xf32> -> vector<2x60xf32>
    %332 = arith.addf %331, %5 : vector<2x60xf32>
    %cst_78 = arith.constant dense<0.000000e+00> : vector<2x60xf32>
    %333 = tpu.matmul %325, %2, %cst_78 {dimension_numbers = #tpu.dot_dimension_numbers<[1], [0], [0], [1], [0, 0, 1, 1], [], []>} : vector<2x20xf32>, vector<20x60xf32>, vector<2x60xf32> -> vector<2x60xf32>
    %334 = vector.extract_strided_slice %332 {offsets = [0, 0], sizes = [2, 40], strides = [1, 1]} : vector<2x60xf32> to vector<2x40xf32>
    %335 = vector.extract_strided_slice %333 {offsets = [0, 0], sizes = [2, 40], strides = [1, 1]} : vector<2x60xf32> to vector<2x40xf32>
    %336 = arith.addf %334, %335 : vector<2x40xf32>
    %337 = arith.negf %336 : vector<2x40xf32>
    %338 = math.exp %337 : vector<2x40xf32>
    %cst_79 = arith.constant 1.000000e+00 : f32
    %339 = vector.broadcast %cst_79 : f32 to vector<2x40xf32>
    %340 = arith.addf %339, %338 : vector<2x40xf32>
    %341 = arith.divf %339, %340 : vector<2x40xf32>
    %342 = vector.extract_strided_slice %341 {offsets = [0, 0], sizes = [2, 20], strides = [1, 1]} : vector<2x40xf32> to vector<2x20xf32>
    %343 = vector.extract_strided_slice %341 {offsets = [0, 20], sizes = [2, 20], strides = [1, 1]} : vector<2x40xf32> to vector<2x20xf32>
    %344 = vector.extract_strided_slice %332 {offsets = [0, 40], sizes = [2, 20], strides = [1, 1]} : vector<2x60xf32> to vector<2x20xf32>
    %345 = vector.extract_strided_slice %333 {offsets = [0, 40], sizes = [2, 20], strides = [1, 1]} : vector<2x60xf32> to vector<2x20xf32>
    %346 = arith.addf %345, %8 : vector<2x20xf32>
    %347 = arith.mulf %342, %346 : vector<2x20xf32>
    %348 = arith.addf %344, %347 : vector<2x20xf32>
    %349 = math.tanh %348 : vector<2x20xf32>
    %cst_80 = arith.constant 1.000000e+00 : f32
    %350 = vector.broadcast %cst_80 : f32 to vector<2x20xf32>
    %351 = arith.subf %350, %343 : vector<2x20xf32>
    %352 = arith.mulf %351, %349 : vector<2x20xf32>
    %353 = arith.mulf %343, %325 : vector<2x20xf32>
    %354 = arith.addf %352, %353 : vector<2x20xf32>
    %c11 = arith.constant 11 : index
    %c0_81 = arith.constant 0 : index
    %c0_82 = arith.constant 0 : index
    %355 = vector.load %arg9[%c11, %c0_81, %c0_82] : memref<16x2x20xf32, #tpu.memory_space<vmem>>, vector<1x2x20xf32>
    %356 = vector.shape_cast %355 : vector<1x2x20xf32> to vector<2x20xf32>
    %357 = vector.shape_cast %354 : vector<2x20xf32> to vector<1x2x20xf32>
    tpu.vector_store %arg9[%c11, %c0_81, %c0_82], %357 {strides = array<i32>} : memref<16x2x20xf32, #tpu.memory_space<vmem>>, vector<1x2x20xf32>,
    %cst_83 = arith.constant dense<0.000000e+00> : vector<2x60xf32>
    %358 = tpu.matmul %354, %2, %cst_83 {dimension_numbers = #tpu.dot_dimension_numbers<[1], [0], [0], [1], [0, 0, 1, 1], [], []>} : vector<2x20xf32>, vector<20x60xf32>, vector<2x60xf32> -> vector<2x60xf32>
    %359 = vector.extract_strided_slice %5 {offsets = [0, 0], sizes = [2, 40], strides = [1, 1]} : vector<2x60xf32> to vector<2x40xf32>
    %360 = vector.extract_strided_slice %358 {offsets = [0, 0], sizes = [2, 40], strides = [1, 1]} : vector<2x60xf32> to vector<2x40xf32>
    %361 = arith.addf %359, %360 : vector<2x40xf32>
    %362 = arith.negf %361 : vector<2x40xf32>
    %363 = math.exp %362 : vector<2x40xf32>
    %cst_84 = arith.constant 1.000000e+00 : f32
    %364 = vector.broadcast %cst_84 : f32 to vector<2x40xf32>
    %365 = arith.addf %364, %363 : vector<2x40xf32>
    %366 = arith.divf %364, %365 : vector<2x40xf32>
    %367 = vector.extract_strided_slice %366 {offsets = [0, 0], sizes = [2, 20], strides = [1, 1]} : vector<2x40xf32> to vector<2x20xf32>
    %368 = vector.extract_strided_slice %366 {offsets = [0, 20], sizes = [2, 20], strides = [1, 1]} : vector<2x40xf32> to vector<2x20xf32>
    %369 = vector.extract_strided_slice %5 {offsets = [0, 40], sizes = [2, 20], strides = [1, 1]} : vector<2x60xf32> to vector<2x20xf32>
    %370 = vector.extract_strided_slice %358 {offsets = [0, 40], sizes = [2, 20], strides = [1, 1]} : vector<2x60xf32> to vector<2x20xf32>
    %371 = arith.addf %370, %8 : vector<2x20xf32>
    %372 = arith.mulf %367, %371 : vector<2x20xf32>
    %373 = arith.addf %369, %372 : vector<2x20xf32>
    %374 = math.tanh %373 : vector<2x20xf32>
    %cst_85 = arith.constant 1.000000e+00 : f32
    %375 = vector.broadcast %cst_85 : f32 to vector<2x20xf32>
    %376 = arith.subf %375, %368 : vector<2x20xf32>
    %377 = arith.mulf %376, %374 : vector<2x20xf32>
    %378 = arith.mulf %368, %354 : vector<2x20xf32>
    %379 = arith.addf %377, %378 : vector<2x20xf32>
    %c12 = arith.constant 12 : index
    %c0_86 = arith.constant 0 : index
    %c0_87 = arith.constant 0 : index
    %380 = vector.load %arg9[%c12, %c0_86, %c0_87] : memref<16x2x20xf32, #tpu.memory_space<vmem>>, vector<1x2x20xf32>
    %381 = vector.shape_cast %380 : vector<1x2x20xf32> to vector<2x20xf32>
    %382 = vector.shape_cast %379 : vector<2x20xf32> to vector<1x2x20xf32>
    tpu.vector_store %arg9[%c12, %c0_86, %c0_87], %382 {strides = array<i32>} : memref<16x2x20xf32, #tpu.memory_space<vmem>>, vector<1x2x20xf32>,
    %cst_88 = arith.constant dense<0.000000e+00> : vector<2x60xf32>
    %383 = tpu.matmul %379, %2, %cst_88 {dimension_numbers = #tpu.dot_dimension_numbers<[1], [0], [0], [1], [0, 0, 1, 1], [], []>} : vector<2x20xf32>, vector<20x60xf32>, vector<2x60xf32> -> vector<2x60xf32>
    %384 = vector.extract_strided_slice %5 {offsets = [0, 0], sizes = [2, 40], strides = [1, 1]} : vector<2x60xf32> to vector<2x40xf32>
    %385 = vector.extract_strided_slice %383 {offsets = [0, 0], sizes = [2, 40], strides = [1, 1]} : vector<2x60xf32> to vector<2x40xf32>
    %386 = arith.addf %384, %385 : vector<2x40xf32>
    %387 = arith.negf %386 : vector<2x40xf32>
    %388 = math.exp %387 : vector<2x40xf32>
    %cst_89 = arith.constant 1.000000e+00 : f32
    %389 = vector.broadcast %cst_89 : f32 to vector<2x40xf32>
    %390 = arith.addf %389, %388 : vector<2x40xf32>
    %391 = arith.divf %389, %390 : vector<2x40xf32>
    %392 = vector.extract_strided_slice %391 {offsets = [0, 0], sizes = [2, 20], strides = [1, 1]} : vector<2x40xf32> to vector<2x20xf32>
    %393 = vector.extract_strided_slice %391 {offsets = [0, 20], sizes = [2, 20], strides = [1, 1]} : vector<2x40xf32> to vector<2x20xf32>
    %394 = vector.extract_strided_slice %5 {offsets = [0, 40], sizes = [2, 20], strides = [1, 1]} : vector<2x60xf32> to vector<2x20xf32>
    %395 = vector.extract_strided_slice %383 {offsets = [0, 40], sizes = [2, 20], strides = [1, 1]} : vector<2x60xf32> to vector<2x20xf32>
    %396 = arith.addf %395, %8 : vector<2x20xf32>
    %397 = arith.mulf %392, %396 : vector<2x20xf32>
    %398 = arith.addf %394, %397 : vector<2x20xf32>
    %399 = math.tanh %398 : vector<2x20xf32>
    %cst_90 = arith.constant 1.000000e+00 : f32
    %400 = vector.broadcast %cst_90 : f32 to vector<2x20xf32>
    %401 = arith.subf %400, %393 : vector<2x20xf32>
    %402 = arith.mulf %401, %399 : vector<2x20xf32>
    %403 = arith.mulf %393, %379 : vector<2x20xf32>
    %404 = arith.addf %402, %403 : vector<2x20xf32>
    %c13 = arith.constant 13 : index
    %c0_91 = arith.constant 0 : index
    %c0_92 = arith.constant 0 : index
    %405 = vector.load %arg9[%c13, %c0_91, %c0_92] : memref<16x2x20xf32, #tpu.memory_space<vmem>>, vector<1x2x20xf32>
    %406 = vector.shape_cast %405 : vector<1x2x20xf32> to vector<2x20xf32>
    %407 = vector.shape_cast %404 : vector<2x20xf32> to vector<1x2x20xf32>
    tpu.vector_store %arg9[%c13, %c0_91, %c0_92], %407 {strides = array<i32>} : memref<16x2x20xf32, #tpu.memory_space<vmem>>, vector<1x2x20xf32>,
    %cst_93 = arith.constant dense<0.000000e+00> : vector<2x60xf32>
    %408 = tpu.matmul %404, %2, %cst_93 {dimension_numbers = #tpu.dot_dimension_numbers<[1], [0], [0], [1], [0, 0, 1, 1], [], []>} : vector<2x20xf32>, vector<20x60xf32>, vector<2x60xf32> -> vector<2x60xf32>
    %409 = vector.extract_strided_slice %5 {offsets = [0, 0], sizes = [2, 40], strides = [1, 1]} : vector<2x60xf32> to vector<2x40xf32>
    %410 = vector.extract_strided_slice %408 {offsets = [0, 0], sizes = [2, 40], strides = [1, 1]} : vector<2x60xf32> to vector<2x40xf32>
    %411 = arith.addf %409, %410 : vector<2x40xf32>
    %412 = arith.negf %411 : vector<2x40xf32>
    %413 = math.exp %412 : vector<2x40xf32>
    %cst_94 = arith.constant 1.000000e+00 : f32
    %414 = vector.broadcast %cst_94 : f32 to vector<2x40xf32>
    %415 = arith.addf %414, %413 : vector<2x40xf32>
    %416 = arith.divf %414, %415 : vector<2x40xf32>
    %417 = vector.extract_strided_slice %416 {offsets = [0, 0], sizes = [2, 20], strides = [1, 1]} : vector<2x40xf32> to vector<2x20xf32>
    %418 = vector.extract_strided_slice %416 {offsets = [0, 20], sizes = [2, 20], strides = [1, 1]} : vector<2x40xf32> to vector<2x20xf32>
    %419 = vector.extract_strided_slice %5 {offsets = [0, 40], sizes = [2, 20], strides = [1, 1]} : vector<2x60xf32> to vector<2x20xf32>
    %420 = vector.extract_strided_slice %408 {offsets = [0, 40], sizes = [2, 20], strides = [1, 1]} : vector<2x60xf32> to vector<2x20xf32>
    %421 = arith.addf %420, %8 : vector<2x20xf32>
    %422 = arith.mulf %417, %421 : vector<2x20xf32>
    %423 = arith.addf %419, %422 : vector<2x20xf32>
    %424 = math.tanh %423 : vector<2x20xf32>
    %cst_95 = arith.constant 1.000000e+00 : f32
    %425 = vector.broadcast %cst_95 : f32 to vector<2x20xf32>
    %426 = arith.subf %425, %418 : vector<2x20xf32>
    %427 = arith.mulf %426, %424 : vector<2x20xf32>
    %428 = arith.mulf %418, %404 : vector<2x20xf32>
    %429 = arith.addf %427, %428 : vector<2x20xf32>
    %c14 = arith.constant 14 : index
    %c0_96 = arith.constant 0 : index
    %c0_97 = arith.constant 0 : index
    %430 = vector.load %arg9[%c14, %c0_96, %c0_97] : memref<16x2x20xf32, #tpu.memory_space<vmem>>, vector<1x2x20xf32>
    %431 = vector.shape_cast %430 : vector<1x2x20xf32> to vector<2x20xf32>
    %432 = vector.shape_cast %429 : vector<2x20xf32> to vector<1x2x20xf32>
    tpu.vector_store %arg9[%c14, %c0_96, %c0_97], %432 {strides = array<i32>} : memref<16x2x20xf32, #tpu.memory_space<vmem>>, vector<1x2x20xf32>,
    %cst_98 = arith.constant dense<0.000000e+00> : vector<2x60xf32>
    %433 = tpu.matmul %429, %2, %cst_98 {dimension_numbers = #tpu.dot_dimension_numbers<[1], [0], [0], [1], [0, 0, 1, 1], [], []>} : vector<2x20xf32>, vector<20x60xf32>, vector<2x60xf32> -> vector<2x60xf32>
    %434 = vector.extract_strided_slice %5 {offsets = [0, 0], sizes = [2, 40], strides = [1, 1]} : vector<2x60xf32> to vector<2x40xf32>
    %435 = vector.extract_strided_slice %433 {offsets = [0, 0], sizes = [2, 40], strides = [1, 1]} : vector<2x60xf32> to vector<2x40xf32>
    %436 = arith.addf %434, %435 : vector<2x40xf32>
    %437 = arith.negf %436 : vector<2x40xf32>
    %438 = math.exp %437 : vector<2x40xf32>
    %cst_99 = arith.constant 1.000000e+00 : f32
    %439 = vector.broadcast %cst_99 : f32 to vector<2x40xf32>
    %440 = arith.addf %439, %438 : vector<2x40xf32>
    %441 = arith.divf %439, %440 : vector<2x40xf32>
    %442 = vector.extract_strided_slice %441 {offsets = [0, 0], sizes = [2, 20], strides = [1, 1]} : vector<2x40xf32> to vector<2x20xf32>
    %443 = vector.extract_strided_slice %441 {offsets = [0, 20], sizes = [2, 20], strides = [1, 1]} : vector<2x40xf32> to vector<2x20xf32>
    %444 = vector.extract_strided_slice %5 {offsets = [0, 40], sizes = [2, 20], strides = [1, 1]} : vector<2x60xf32> to vector<2x20xf32>
    %445 = vector.extract_strided_slice %433 {offsets = [0, 40], sizes = [2, 20], strides = [1, 1]} : vector<2x60xf32> to vector<2x20xf32>
    %446 = arith.addf %445, %8 : vector<2x20xf32>
    %447 = arith.mulf %442, %446 : vector<2x20xf32>
    %448 = arith.addf %444, %447 : vector<2x20xf32>
    %449 = math.tanh %448 : vector<2x20xf32>
    %cst_100 = arith.constant 1.000000e+00 : f32
    %450 = vector.broadcast %cst_100 : f32 to vector<2x20xf32>
    %451 = arith.subf %450, %443 : vector<2x20xf32>
    %452 = arith.mulf %451, %449 : vector<2x20xf32>
    %453 = arith.mulf %443, %429 : vector<2x20xf32>
    %454 = arith.addf %452, %453 : vector<2x20xf32>
    %c15 = arith.constant 15 : index
    %c0_101 = arith.constant 0 : index
    %c0_102 = arith.constant 0 : index
    %455 = vector.load %arg9[%c15, %c0_101, %c0_102] : memref<16x2x20xf32, #tpu.memory_space<vmem>>, vector<1x2x20xf32>
    %456 = vector.shape_cast %455 : vector<1x2x20xf32> to vector<2x20xf32>
    %457 = vector.shape_cast %454 : vector<2x20xf32> to vector<1x2x20xf32>
    tpu.vector_store %arg9[%c15, %c0_101, %c0_102], %457 {strides = array<i32>} : memref<16x2x20xf32, #tpu.memory_space<vmem>>, vector<1x2x20xf32>,
    %c0_103 = arith.constant 0 : index
    %c0_104 = arith.constant 0 : index
    %458 = vector.load %arg5[%c0_103, %c0_104] : memref<20x4xf32, #tpu.memory_space<vmem>>, vector<20x4xf32>
    %c0_105 = arith.constant 0 : index
    %c0_106 = arith.constant 0 : index
    %459 = vector.load %arg6[%c0_105, %c0_106] : memref<1x4xf32, #tpu.memory_space<vmem>>, vector<1x4xf32>
    %c0_107 = arith.constant 0 : index
    %c0_108 = arith.constant 0 : index
    %c0_109 = arith.constant 0 : index
    %460 = vector.load %arg9[%c0_107, %c0_108, %c0_109] : memref<16x2x20xf32, #tpu.memory_space<vmem>>, vector<16x2x20xf32>
    %461 = vector.extract_strided_slice %460 {offsets = [0, 0, 0], sizes = [16, 1, 20], strides = [1, 1, 1]} : vector<16x2x20xf32> to vector<16x1x20xf32>
    %462 = vector.shape_cast %461 : vector<16x1x20xf32> to vector<16x20xf32>
    %cst_110 = arith.constant dense<0.000000e+00> : vector<16x4xf32>
    %463 = tpu.matmul %462, %458, %cst_110 {dimension_numbers = #tpu.dot_dimension_numbers<[1], [0], [0], [1], [0, 0, 1, 1], [], []>} : vector<16x20xf32>, vector<20x4xf32>, vector<16x4xf32> -> vector<16x4xf32>
    %464 = vector.broadcast %459 : vector<1x4xf32> to vector<16x4xf32>
    %465 = arith.addf %463, %464 : vector<16x4xf32>
    %466 = vector.extract_strided_slice %0 {offsets = [0, 0, 0], sizes = [1, 4, 4], strides = [1, 1, 1]} : vector<2x16x4xf32> to vector<1x4x4xf32>
    %467 = vector.shape_cast %466 : vector<1x4x4xf32> to vector<4x4xf32>
    %c0_111 = arith.constant 0 : index
    %c0_112 = arith.constant 0 : index
    %c0_113 = arith.constant 0 : index
    %468 = vector.load %arg7[%c0_111, %c0_112, %c0_113] : memref<2x20x4xf32, #tpu.memory_space<vmem>>, vector<1x4x4xf32>
    %469 = vector.shape_cast %468 : vector<1x4x4xf32> to vector<4x4xf32>
    %470 = vector.shape_cast %467 : vector<4x4xf32> to vector<1x4x4xf32>
    tpu.vector_store %arg7[%c0_111, %c0_112, %c0_113], %470 {strides = array<i32>} : memref<2x20x4xf32, #tpu.memory_space<vmem>>, vector<1x4x4xf32>,
    %c0_114 = arith.constant 0 : index
    %c4_115 = arith.constant 4 : index
    %c0_116 = arith.constant 0 : index
    %471 = vector.load %arg7[%c0_114, %c4_115, %c0_116] : memref<2x20x4xf32, #tpu.memory_space<vmem>>, vector<1x16x4xf32>
    %472 = vector.shape_cast %471 : vector<1x16x4xf32> to vector<16x4xf32>
    %473 = vector.shape_cast %465 : vector<16x4xf32> to vector<1x16x4xf32>
    tpu.vector_store %arg7[%c0_114, %c4_115, %c0_116], %473 {strides = array<i32>} : memref<2x20x4xf32, #tpu.memory_space<vmem>>, vector<1x16x4xf32>,
    %c0_117 = arith.constant 0 : index
    %c0_118 = arith.constant 0 : index
    %c0_119 = arith.constant 0 : index
    %474 = vector.load %arg8[%c0_117, %c0_118, %c0_119] : memref<2x16x4xf32, #tpu.memory_space<vmem>>, vector<1x16x4xf32>
    %475 = vector.shape_cast %474 : vector<1x16x4xf32> to vector<16x4xf32>
    %476 = vector.shape_cast %465 : vector<16x4xf32> to vector<1x16x4xf32>
    tpu.vector_store %arg8[%c0_117, %c0_118, %c0_119], %476 {strides = array<i32>} : memref<2x16x4xf32, #tpu.memory_space<vmem>>, vector<1x16x4xf32>,
    %477 = vector.extract_strided_slice %460 {offsets = [0, 1, 0], sizes = [16, 1, 20], strides = [1, 1, 1]} : vector<16x2x20xf32> to vector<16x1x20xf32>
    %478 = vector.shape_cast %477 : vector<16x1x20xf32> to vector<16x20xf32>
    %cst_120 = arith.constant dense<0.000000e+00> : vector<16x4xf32>
    %479 = tpu.matmul %478, %458, %cst_120 {dimension_numbers = #tpu.dot_dimension_numbers<[1], [0], [0], [1], [0, 0, 1, 1], [], []>} : vector<16x20xf32>, vector<20x4xf32>, vector<16x4xf32> -> vector<16x4xf32>
    %480 = vector.broadcast %459 : vector<1x4xf32> to vector<16x4xf32>
    %481 = arith.addf %479, %480 : vector<16x4xf32>
    %482 = vector.extract_strided_slice %0 {offsets = [1, 0, 0], sizes = [1, 4, 4], strides = [1, 1, 1]} : vector<2x16x4xf32> to vector<1x4x4xf32>
    %483 = vector.shape_cast %482 : vector<1x4x4xf32> to vector<4x4xf32>
    %c1_121 = arith.constant 1 : index
    %c0_122 = arith.constant 0 : index
    %c0_123 = arith.constant 0 : index
    %484 = vector.load %arg7[%c1_121, %c0_122, %c0_123] : memref<2x20x4xf32, #tpu.memory_space<vmem>>, vector<1x4x4xf32>
    %485 = vector.shape_cast %484 : vector<1x4x4xf32> to vector<4x4xf32>
    %486 = vector.shape_cast %483 : vector<4x4xf32> to vector<1x4x4xf32>
    tpu.vector_store %arg7[%c1_121, %c0_122, %c0_123], %486 {strides = array<i32>} : memref<2x20x4xf32, #tpu.memory_space<vmem>>, vector<1x4x4xf32>,
    %c1_124 = arith.constant 1 : index
    %c4_125 = arith.constant 4 : index
    %c0_126 = arith.constant 0 : index
    %487 = vector.load %arg7[%c1_124, %c4_125, %c0_126] : memref<2x20x4xf32, #tpu.memory_space<vmem>>, vector<1x16x4xf32>
    %488 = vector.shape_cast %487 : vector<1x16x4xf32> to vector<16x4xf32>
    %489 = vector.shape_cast %481 : vector<16x4xf32> to vector<1x16x4xf32>
    tpu.vector_store %arg7[%c1_124, %c4_125, %c0_126], %489 {strides = array<i32>} : memref<2x20x4xf32, #tpu.memory_space<vmem>>, vector<1x16x4xf32>,
    %c1_127 = arith.constant 1 : index
    %c0_128 = arith.constant 0 : index
    %c0_129 = arith.constant 0 : index
    %490 = vector.load %arg8[%c1_127, %c0_128, %c0_129] : memref<2x16x4xf32, #tpu.memory_space<vmem>>, vector<1x16x4xf32>
    %491 = vector.shape_cast %490 : vector<1x16x4xf32> to vector<16x4xf32>
    %492 = vector.shape_cast %481 : vector<16x4xf32> to vector<1x16x4xf32>
    tpu.vector_store %arg8[%c1_127, %c0_128, %c0_129], %492 {strides = array<i32>} : memref<2x16x4xf32, #tpu.memory_space<vmem>>, vector<1x16x4xf32>,
    return
  }
}

</mosaic_0001>

<bundles_post_ra>
// kernel: rnn_layer_forward.1
= control target key start
LH: loop header
LB: loop body
LE: loop exit
PB: predicated region body
PF: predicated region fallthrough
CT: control target
= control target key end

     0   :  { %vm57_vm0 = vcmask 1043456   ;;  %v3494_v0 = vmov 0.0   ;;  %vm3495_vm1 = vmmov 0   ;;  %vm52_vm2 = vcmask 1041409   ;;  %s3497_s16 = smov 40   ;;  %s3498_s18 = smov 88   ;;  %s4079_s1 = inlined_call_operand.vmem [shape: f32[4,60], index: 1, kind: input, shape index: {}]   ;;  %s4080_s0 = inlined_call_operand.vmem [shape: f32[2,16,4], index: 0, kind: input, shape index: {}]   ;;  %s4081_s2 = inlined_call_operand.vmem [shape: f32[20,60], index: 2, kind: input, shape index: {}]   ;;  %s4082_s4 = inlined_call_operand.vmem [shape: f32[1,20], index: 4, kind: input, shape index: {}]   ;;  %s4083_s3 = inlined_call_operand.vmem [shape: f32[1,60], index: 3, kind: input, shape index: {}]   ;;  %s4084_s5 = inlined_call_operand.vmem [shape: f32[20,4], index: 5, kind: input, shape index: {}]   ;;  %s4085_s7 = inlined_call_operand.vmem [shape: f32[2,20,4], index: 7, kind: output, shape index: {0}]   ;;  %s4086_s6 = inlined_call_operand.vmem [shape: f32[1,4], index: 6, kind: input, shape index: {}]   ;;  %s4087_s8 = inlined_call_operand.vmem [shape: f32[2,16,4], index: 8, kind: output, shape index: {1}]  }
   0x1   :  { %3112 = vmatprep.subr.mxu1 %v3494_v0  ;;  %v3549_v1 = vld [vmem:[%s4079_s1] sm:$0xf]  ;;  %3114 = vmatprep.mubr.msk.f32.mxu1 %vm3495_vm1, %v3494_v0  ;;  %v3561_v3 = vld [vmem:[%s4080_s0 + $0x10] sm:$0xff]  ;;  %vm54_vm3 = vcmask 31744   ;;  %v34_v6 = vld [vmem:[%s4081_s2 + $0x8] sm:$0xff]  ;;  %v3496_v7 = vmov 0.0|0.0  }
   0x2   :  { %v3556_v2 = vld [vmem:[%s4080_s0] sm:$0xff]  ;;  %3113 = vmatpush3.msk.msra.mxu1 %vm57_vm0, %v3549_v1  ;;  %v51_v4 = vrot.slane %v3561_v3, 7  ;;  %3126 = vmatprep.subr.mxu0 %v3494_v0  ;;  %v3595_v11 = vld [vmem:[%s4081_s2 + $0x10] sm:$0xf]  ;;  %s3499_s21 = smov 108   ;;  %vm242_vm4 = vcmask 156672  }
   0x3   :  { %v33_v5 = vld [vmem:[%s4081_s2] sm:$0xff]  ;;  %3334 = vmatprep.subr.bf16.mxu1 %v3496_v7  ;;  %3127 = vmatpush3.msk.msra.mxu0 %vm57_vm0, %v3549_v1  ;;  %v244_v29 = vrot.slane %v3556_v2, 1  ;;  %vm131_vm5 = vcmask 162816   ;;  %v423_v53 = vrot.slane %v3556_v2, 2  ;;  %v424_v54 = vrot.slane %v3561_v3, 1 }
   0x4   :  { %v3574_v8 = vpack.c.bf16 %v34_v6, %v33_v5  ;;  %v2930_v9 = vld [vmem:[%s4082_s4] ss:$0 sm:$0xff]  ;;  %v53_v10 = vsel %vm52_vm2, %v51_v4, %v3556_v2  ;;  %3128 = vmatprep.mubr.msk.f32.mxu0 %vm3495_vm1, %v3494_v0  ;;  %3337 = vmatprep.subr.bf16.mxu0 %v3496_v7  ;;  %vm2688_vm6 = vcmask 1042434   ;;  %vm2691_vm7 = vcmask 1043459  }
   0x5   :  { %215 = vrot.lane.b32.xlu0 %v2930_v9, %s3497_s16  ;;  %3115 = vmatmul.mubr.msk.f32.vlgmr.msra.gmra.mrb[0].mxu1 %vm54_vm3, %v53_v10  ;;  %v3613_v18 = vld [vmem:[%s4083_s3] ss:$0 sm:$0xff]  ;;  %v245_v30 = vsel %vm52_vm2, %v3561_v3, %v244_v29  ;;  %v425_v55 = vsel %vm52_vm2, %v424_v54, %v423_v53  ;;  %vm2694_vm8 = vcmask 1044484   ;;  %vm2697_vm9 = vcmask 1045509  }
   0x6   :  { %3336 = vmatpush3.bf16.msra.mxu1 %v3574_v8  ;;  %3123 = vmatprep.mubr.msk.f32.mxu1 %vm3495_vm1, %v3494_v0  ;;  %vm2700_vm10 = vcmask 1046534   ;;  %vm2703_vm11 = vcmask 1047559   ;;  %vm2801_vm12 = vcmask 27648  }
   0x7   :  { %3121 = vmatprep.subr.mxu1 %v3494_v0  ;;  %3129 = vmatmul.mubr.msk.f32.vlgmr.msra.gmra.mrb[0].mxu0 %vm54_vm3, %v245_v30  ;;  %2802 = vst.msk [vmem:[%s4085_s7] sm:$0xf] %vm2801_vm12, %v3556_v2  ;;  %3009 = vst.msk [vmem:[%s4085_s7 + $0x18] sm:$0xf] %vm2801_vm12, %v3561_v3 }
   0x8   :  { %3339 = vmatpush3.bf16.msra.mxu0 %v3574_v8  ;;  %3137 = vmatprep.mubr.msk.f32.mxu0 %vm3495_vm1, %v3494_v0 }
   0x9   :  { %3135 = vmatprep.subr.mxu0 %v3494_v0 }
   0xa   :  { %3122 = vmatpush3.msk.msra.mxu1 %vm57_vm0, %v3595_v11 }
   0xb   :  { %3124 = vmatmul.mubr.f32.vlgmr.msra.gmra.mrb[2].mxu1 %v3494_v0  ;;  %3140 = vmatprep.subr.mxu1 %v3494_v0 }
   0xc   :  { %3141 = vmatpush3.msk.msra.mxu1 %vm57_vm0, %v3549_v1  ;;  %3142 = vmatprep.mubr.msk.f32.mxu1 %vm3495_vm1, %v3494_v0 }
   0xd   :  { %3340 = vmatprep.subr.bf16.mxu1 %v3496_v7  ;;  %3136 = vmatpush3.msk.msra.mxu0 %vm57_vm0, %v3595_v11 }
   0xe   :  { %3154 = vmatprep.subr.mxu0 %v3494_v0 }
   0xf   :  { %3143 = vmatmul.mubr.msk.f32.vlgmr.msra.gmra.mrb[4].mxu1 %vm54_vm3, %v425_v55  ;;  %v783_v55 = vrot.slane %v3556_v2, 4 }
  0x10   :  { %3342 = vmatpush3.bf16.msra.mxu1 %v3574_v8  ;;  %3151 = vmatprep.mubr.msk.f32.mxu1 %vm3495_vm1, %v3494_v0 }
  0x11   :  { %3149 = vmatprep.subr.mxu1 %v3494_v0 }
  0x14   :  { %3150 = vmatpush3.msk.msra.mxu1 %vm57_vm0, %v3595_v11 }
  0x15   :  { %3168 = vmatprep.subr.mxu1 %v3494_v0 }
  0x77   :  { %v3606_v14 = vpop.permute.xlu0 %215 }
  0xd8   :  { %v127_v12 = vpop.f32.mrb[0].mxu1 }
  0xd9   :  { %v3116_v13 = vpop.f32.mrb[1].mxu1  ;;  %v128_v19 = vadd.f32 %v3613_v18, %v127_v12 }
  0xda   :  { %v314_v37 = vpop.f32.mrb[0].mxu0 }
  0xdb   :  { %v3130_v38 = vpop.f32.mrb[1].mxu0  ;;  %v315_v43 = vadd.f32 %v3613_v18, %v314_v37 }
  0xde   :  { %v204_v15 = vpop.f32.mrb[2].mxu1 }
  0xdf   :  { %v218_v16 = vadd.f32 %v3606_v14, %v204_v15  ;;  %v3125_v17 = vpop.f32.mrb[3].mxu1  ;;  %v208_v20 = vadd.f32 %v204_v15, %v128_v19 }
  0xe1   :  { %220 = vrot.lane.b32.xlu0 %v218_v16, %s3498_s18  ;;  %v2934_v21 = vmul.f32 -1.442695, %v208_v20 }
  0xe2   :  { %v494_v62 = vpop.f32.mrb[4].mxu1 }
  0xe3   :  { %3396 = vpow2.f32 %v2934_v21  ;;  %v3144_v63 = vpop.f32.mrb[5].mxu1  ;;  %v495_v10 = vadd.f32 %v3613_v18, %v494_v62 }
  0xed   :  { %v3397_v22 = vpop.eup %3396 }
  0xee   :  { %v212_v23 = vadd.f32 1.0, %v3397_v22 }
  0xf0   :  { %3398 = vrcp.f32 %v212_v23  ;;  %v603_v23 = vrot.slane %v3556_v2, 3 }
  0xfa   :  { %v3399_v24 = vpop.eup %3398 }
  0xfb   :  { %v230_v32 = vsub.f32 1.0, %v3399_v24  ;;  %v236_v34 = vmul.f32 0.0, %v3399_v24 }
 0x153   :  { %v221_v25 = vpop.permute.xlu0 %220 }
 0x154   :  { %v223_v26 = vmul.f32 %v3399_v24, %v221_v25  ;;  %v604_v24 = vrot.slane %v3561_v3, 2 }
 0x156   :  { %225 = vrot.lane.b32.xlu1 %v223_v26, %s3497_s16  ;;  %v605_v25 = vsel %vm52_vm2, %v604_v24, %v603_v23 }
 0x1c8   :  { %v226_v27 = vpop.permute.xlu1 %225 }
 0x1c9   :  { %v228_v28 = vadd.f32 %v226_v27, %v128_v19 }
 0x1cb   :  { %3400 = vtanh.f32 %v228_v28 }
 0x1d5   :  { %v3401_v31 = vpop.eup %3400 }
 0x1d6   :  { %232 = vrot.lane.b32.xlu1 %v3401_v31, %s3499_s21 }
 0x248   :  { %v233_v33 = vpop.permute.xlu1 %232 }
 0x249   :  { %v235_v35 = vmul.f32 %v233_v33, %v230_v32 }
 0x24b   :  { %v237_v36 = vadd.f32 %v236_v34, %v235_v35 }
 0x24d   :  { %239 = vrot.lane.b32.xlu0 %v237_v36, %s3499_s21 }
 0x2bf   :  { %v240_v39 = vpop.permute.xlu0 %239 }
 0x2c0   :  { %243 = vst.msk [vmem:[#allocation2] sm:$0x3] %vm242_vm4, %v240_v39  ;;  %3138 = vmatmul.mubr.msk.f32.vlgmr.msra.gmra.mrb[2].mxu0 %vm131_vm5, %v240_v39 }
 0x2c1   :  { %3155 = vmatpush3.msk.msra.mxu0 %vm57_vm0, %v3549_v1  ;;  %3156 = vmatprep.mubr.msk.f32.mxu0 %vm3495_vm1, %v3494_v0 }
 0x2c2   :  { %3343 = vmatprep.subr.bf16.mxu0 %v3496_v7 }
 0x2c4   :  { %3157 = vmatmul.mubr.msk.f32.vlgmr.msra.gmra.mrb[4].mxu0 %vm54_vm3, %v605_v25 }
 0x2c5   :  { %3345 = vmatpush3.bf16.msra.mxu0 %v3574_v8  ;;  %3165 = vmatprep.mubr.msk.f32.mxu0 %vm3495_vm1, %v3494_v0 }
 0x2c6   :  { %3163 = vmatprep.subr.mxu0 %v3494_v0 }
 0x2c7   :  { %v3685_v35 = vld [vmem:[#allocation2] sm:$0x3] }
 0x2c8   :  { %v2807_v38 = vrot.slane %v3685_v35, 1 }
 0x2c9   :  { %3164 = vmatpush3.msk.msra.mxu0 %vm57_vm0, %v3595_v11 }
 0x2ca   :  { %3182 = vmatprep.subr.mxu0 %v3494_v0 }
 0x393   :  { %v386_v40 = vpop.f32.mrb[2].mxu0 }
 0x394   :  { %v397_v41 = vadd.f32 %v386_v40, %v3606_v14  ;;  %v3139_v42 = vpop.f32.mrb[3].mxu0  ;;  %v390_v44 = vadd.f32 %v386_v40, %v315_v43 }
 0x396   :  { %399 = vrot.lane.b32.xlu1 %v397_v41, %s3498_s18  ;;  %v2939_v45 = vmul.f32 -1.442695, %v390_v44 }
 0x397   :  { %v674_v32 = vpop.f32.mrb[4].mxu0 }
 0x398   :  { %3402 = vpow2.f32 %v2939_v45  ;;  %v3158_v33 = vpop.f32.mrb[5].mxu0  ;;  %v675_v45 = vadd.f32 %v3613_v18, %v674_v32 }
 0x3a2   :  { %v3403_v46 = vpop.eup %3402 }
 0x3a3   :  { %v394_v47 = vadd.f32 1.0, %v3403_v46 }
 0x3a5   :  { %3404 = vrcp.f32 %v394_v47 }
 0x3af   :  { %v3405_v48 = vpop.eup %3404 }
 0x3b0   :  { %v409_v57 = vsub.f32 1.0, %v3405_v48  ;;  %v415_v59 = vmul.f32 %v3405_v48, %v237_v36 }
 0x408   :  { %v400_v49 = vpop.permute.xlu1 %399 }
 0x409   :  { %v402_v50 = vmul.f32 %v3405_v48, %v400_v49 }
 0x40b   :  { %404 = vrot.lane.b32.xlu0 %v402_v50, %s3497_s16 }
 0x47d   :  { %v405_v51 = vpop.permute.xlu0 %404 }
 0x47e   :  { %v407_v52 = vadd.f32 %v405_v51, %v315_v43 }
 0x480   :  { %3406 = vtanh.f32 %v407_v52 }
 0x48a   :  { %v3407_v56 = vpop.eup %3406 }
 0x48b   :  { %411 = vrot.lane.b32.xlu1 %v3407_v56, %s3499_s21  ;;  %v784_v56 = vrot.slane %v3561_v3, 3 }
 0x4fd   :  { %v412_v58 = vpop.permute.xlu1 %411 }
 0x4fe   :  { %v414_v60 = vmul.f32 %v412_v58, %v409_v57  ;;  %v785_v57 = vsel %vm52_vm2, %v784_v56, %v783_v55 }
 0x500   :  { %v416_v61 = vadd.f32 %v415_v59, %v414_v60 }
 0x502   :  { %418 = vrot.lane.b32.xlu0 %v416_v61, %s3499_s21 }
 0x574   :  { %v419_v4 = vpop.permute.xlu0 %418 }
 0x575   :  { %422 = vst.msk [vmem:[#allocation2 + $0x2] sm:$0x3] %vm242_vm4, %v419_v4  ;;  %3152 = vmatmul.mubr.msk.f32.vlgmr.msra.gmra.mrb[6].mxu1 %vm131_vm5, %v419_v4 }
 0x576   :  { %3169 = vmatpush3.msk.msra.mxu1 %vm57_vm0, %v3549_v1  ;;  %3170 = vmatprep.mubr.msk.f32.mxu1 %vm3495_vm1, %v3494_v0 }
 0x577   :  { %3346 = vmatprep.subr.bf16.mxu1 %v3496_v7 }
 0x579   :  { %3171 = vmatmul.mubr.msk.f32.vlgmr.msra.gmra.mrb[8].mxu1 %vm54_vm3, %v785_v57 }
 0x57a   :  { %3348 = vmatpush3.bf16.msra.mxu1 %v3574_v8  ;;  %3179 = vmatprep.mubr.msk.f32.mxu1 %vm3495_vm1, %v3494_v0 }
 0x57b   :  { %3177 = vmatprep.subr.mxu1 %v3494_v0 }
 0x57c   :  { %v3687_v36 = vld [vmem:[#allocation2 + $0x2] sm:$0x3] }
 0x57d   :  { %v2808_v40 = vsel %vm52_vm2, %v3687_v36, %v2807_v38 }
 0x57e   :  { %3178 = vmatpush3.msk.msra.mxu1 %vm57_vm0, %v3595_v11 }
 0x57f   :  { %3196 = vmatprep.subr.mxu1 %v3494_v0 }
 0x648   :  { %v566_v5 = vpop.f32.mrb[6].mxu1 }
 0x649   :  { %v577_v6 = vadd.f32 %v566_v5, %v3606_v14  ;;  %v3153_v9 = vpop.f32.mrb[7].mxu1  ;;  %v570_v12 = vadd.f32 %v566_v5, %v495_v10 }
 0x64b   :  { %579 = vrot.lane.b32.xlu1 %v577_v6, %s3498_s18  ;;  %v2944_v13 = vmul.f32 -1.442695, %v570_v12 }
 0x64c   :  { %v854_v4 = vpop.f32.mrb[8].mxu1 }
 0x64d   :  { %3408 = vpow2.f32 %v2944_v13  ;;  %v3172_v5 = vpop.f32.mrb[9].mxu1 }
 0x657   :  { %v3409_v15 = vpop.eup %3408 }
 0x658   :  { %v574_v16 = vadd.f32 1.0, %v3409_v15 }
 0x65a   :  { %3410 = vrcp.f32 %v574_v16 }
 0x664   :  { %v3411_v17 = vpop.eup %3410 }
 0x665   :  { %v589_v27 = vsub.f32 1.0, %v3411_v17  ;;  %v595_v29 = vmul.f32 %v3411_v17, %v416_v61 }
 0x6bd   :  { %v580_v19 = vpop.permute.xlu1 %579 }
 0x6be   :  { %v582_v20 = vmul.f32 %v3411_v17, %v580_v19  ;;  %v855_v17 = vadd.f32 %v3613_v18, %v854_v4 }
 0x6c0   :  { %584 = vrot.lane.b32.xlu0 %v582_v20, %s3497_s16 }
 0x732   :  { %v585_v21 = vpop.permute.xlu0 %584 }
 0x733   :  { %v587_v22 = vadd.f32 %v585_v21, %v495_v10 }
 0x735   :  { %3412 = vtanh.f32 %v587_v22 }
 0x73f   :  { %v3413_v26 = vpop.eup %3412 }
 0x740   :  { %591 = vrot.lane.b32.xlu1 %v3413_v26, %s3499_s21 }
 0x7b2   :  { %v592_v28 = vpop.permute.xlu1 %591 }
 0x7b3   :  { %v594_v30 = vmul.f32 %v592_v28, %v589_v27  ;;  %v963_v28 = vrot.slane %v3556_v2, 5 }
 0x7b5   :  { %v596_v31 = vadd.f32 %v595_v29, %v594_v30  ;;  %v964_v29 = vrot.slane %v3561_v3, 4 }
 0x7b7   :  { %598 = vrot.lane.b32.xlu0 %v596_v31, %s3499_s21  ;;  %v965_v30 = vsel %vm52_vm2, %v964_v29, %v963_v28 }
 0x829   :  { %v599_v34 = vpop.permute.xlu0 %598 }
 0x82a   :  { %602 = vst.msk [vmem:[#allocation2 + $0x4] sm:$0x3] %vm242_vm4, %v599_v34  ;;  %3166 = vmatmul.mubr.msk.f32.vlgmr.msra.gmra.mrb[6].mxu0 %vm131_vm5, %v599_v34 }
 0x82b   :  { %3183 = vmatpush3.msk.msra.mxu0 %vm57_vm0, %v3549_v1  ;;  %3184 = vmatprep.mubr.msk.f32.mxu0 %vm3495_vm1, %v3494_v0 }
 0x82c   :  { %3349 = vmatprep.subr.bf16.mxu0 %v3496_v7 }
 0x82e   :  { %3185 = vmatmul.mubr.msk.f32.vlgmr.msra.gmra.mrb[8].mxu0 %vm54_vm3, %v965_v30 }
 0x82f   :  { %3351 = vmatpush3.bf16.msra.mxu0 %v3574_v8  ;;  %3193 = vmatprep.mubr.msk.f32.mxu0 %vm3495_vm1, %v3494_v0 }
 0x830   :  { %3191 = vmatprep.subr.mxu0 %v3494_v0 }
 0x831   :  { %v3689_v37 = vld [vmem:[#allocation2 + $0x4] sm:$0x3] }
 0x832   :  { %v2809_v39 = vrot.slane %v3689_v37, 7 }
 0x833   :  { %3192 = vmatpush3.msk.msra.mxu0 %vm57_vm0, %v3595_v11 }
 0x834   :  { %v2810_v41 = vsel %vm2688_vm6, %v2809_v39, %v2808_v40  ;;  %3210 = vmatprep.subr.mxu0 %v3494_v0 }
 0x8fd   :  { %v746_v42 = vpop.f32.mrb[6].mxu0 }
 0x8fe   :  { %v757_v43 = vadd.f32 %v746_v42, %v3606_v14  ;;  %v3167_v44 = vpop.f32.mrb[7].mxu0  ;;  %v750_v46 = vadd.f32 %v746_v42, %v675_v45 }
 0x900   :  { %759 = vrot.lane.b32.xlu1 %v757_v43, %s3498_s18  ;;  %v2949_v47 = vmul.f32 -1.442695, %v750_v46 }
 0x901   :  { %v1034_v40 = vpop.f32.mrb[8].mxu0 }
 0x902   :  { %3414 = vpow2.f32 %v2949_v47 }
 0x90c   :  { %v3415_v48 = vpop.eup %3414 }
 0x90d   :  { %v754_v49 = vadd.f32 1.0, %v3415_v48 }
 0x90f   :  { %3416 = vrcp.f32 %v754_v49  ;;  %v1035_v49 = vadd.f32 %v3613_v18, %v1034_v40 }
 0x919   :  { %v3417_v50 = vpop.eup %3416 }
 0x91a   :  { %v769_v59 = vsub.f32 1.0, %v3417_v50  ;;  %v775_v61 = vmul.f32 %v3417_v50, %v596_v31 }
 0x972   :  { %v760_v51 = vpop.permute.xlu1 %759 }
 0x973   :  { %v762_v52 = vmul.f32 %v3417_v50, %v760_v51 }
 0x975   :  { %764 = vrot.lane.b32.xlu0 %v762_v52, %s3497_s16 }
 0x9e7   :  { %v765_v53 = vpop.permute.xlu0 %764 }
 0x9e8   :  { %v767_v54 = vadd.f32 %v765_v53, %v675_v45 }
 0x9ea   :  { %3418 = vtanh.f32 %v767_v54 }
 0x9f4   :  { %v3419_v58 = vpop.eup %3418 }
 0x9f5   :  { %771 = vrot.lane.b32.xlu1 %v3419_v58, %s3499_s21 }
 0xa67   :  { %v772_v60 = vpop.permute.xlu1 %771 }
 0xa68   :  { %v774_v62 = vmul.f32 %v772_v60, %v769_v59  ;;  %v1143_v59 = vrot.slane %v3556_v2, 6  ;;  %v1144_v60 = vrot.slane %v3561_v3, 5 }
 0xa6a   :  { %v776_v63 = vadd.f32 %v775_v61, %v774_v62  ;;  %v1145_v61 = vsel %vm52_vm2, %v1144_v60, %v1143_v59 }
 0xa6c   :  { %778 = vrot.lane.b32.xlu0 %v776_v63, %s3499_s21 }
 0xade   :  { %v779_v6 = vpop.permute.xlu0 %778 }
 0xadf   :  { %782 = vst.msk [vmem:[#allocation2 + $0x6] sm:$0x3] %vm242_vm4, %v779_v6  ;;  %3180 = vmatmul.mubr.msk.f32.vlgmr.msra.gmra.mrb[10].mxu1 %vm131_vm5, %v779_v6 }
 0xae0   :  { %3197 = vmatpush3.msk.msra.mxu1 %vm57_vm0, %v3549_v1  ;;  %3198 = vmatprep.mubr.msk.f32.mxu1 %vm3495_vm1, %v3494_v0 }
 0xae1   :  { %3352 = vmatprep.subr.bf16.mxu1 %v3496_v7 }
 0xae3   :  { %3199 = vmatmul.mubr.msk.f32.vlgmr.msra.gmra.mrb[12].mxu1 %vm54_vm3, %v1145_v61 }
 0xae4   :  { %3354 = vmatpush3.bf16.msra.mxu1 %v3574_v8  ;;  %3207 = vmatprep.mubr.msk.f32.mxu1 %vm3495_vm1, %v3494_v0 }
 0xae5   :  { %3205 = vmatprep.subr.mxu1 %v3494_v0 }
 0xae6   :  { %v3720_v9 = vld [vmem:[#allocation2 + $0x6] sm:$0x3] }
 0xae7   :  { %v2811_v10 = vrot.slane %v3720_v9, 6 }
 0xae8   :  { %3206 = vmatpush3.msk.msra.mxu1 %vm57_vm0, %v3595_v11 }
 0xae9   :  { %v2812_v12 = vsel %vm2691_vm7, %v2811_v10, %v2810_v41  ;;  %v3186_v41 = vpop.f32.mrb[9].mxu0  ;;  %3224 = vmatprep.subr.mxu1 %v3494_v0 }
 0xbb2   :  { %v926_v13 = vpop.f32.mrb[10].mxu1 }
 0xbb3   :  { %v937_v15 = vadd.f32 %v926_v13, %v3606_v14  ;;  %v3181_v16 = vpop.f32.mrb[11].mxu1  ;;  %v930_v19 = vadd.f32 %v926_v13, %v855_v17 }
 0xbb5   :  { %939 = vrot.lane.b32.xlu1 %v937_v15, %s3498_s18  ;;  %v2954_v20 = vmul.f32 -1.442695, %v930_v19 }
 0xbb7   :  { %3420 = vpow2.f32 %v2954_v20 }
 0xbc1   :  { %v3421_v21 = vpop.eup %3420 }
 0xbc2   :  { %v934_v22 = vadd.f32 1.0, %v3421_v21 }
 0xbc4   :  { %3422 = vrcp.f32 %v934_v22 }
 0xbce   :  { %v3423_v23 = vpop.eup %3422 }
 0xbcf   :  { %v949_v32 = vsub.f32 1.0, %v3423_v23  ;;  %v955_v34 = vmul.f32 %v3423_v23, %v776_v63 }
 0xc27   :  { %v940_v24 = vpop.permute.xlu1 %939 }
 0xc28   :  { %v942_v25 = vmul.f32 %v3423_v23, %v940_v24 }
 0xc2a   :  { %944 = vrot.lane.b32.xlu0 %v942_v25, %s3497_s16 }
 0xc9c   :  { %v945_v26 = vpop.permute.xlu0 %944 }
 0xc9d   :  { %v947_v27 = vadd.f32 %v945_v26, %v855_v17 }
 0xc9f   :  { %3424 = vtanh.f32 %v947_v27 }
 0xca9   :  { %v3425_v31 = vpop.eup %3424 }
 0xcaa   :  { %951 = vrot.lane.b32.xlu1 %v3425_v31, %s3499_s21 }
 0xd1c   :  { %v952_v33 = vpop.permute.xlu1 %951 }
 0xd1d   :  { %v954_v38 = vmul.f32 %v952_v33, %v949_v32  ;;  %v1323_v33 = vrot.slane %v3556_v2, 7 }
 0xd1f   :  { %v956_v39 = vadd.f32 %v955_v34, %v954_v38  ;;  %v1324_v34 = vrot.slane %v3561_v3, 6 }
 0xd21   :  { %958 = vrot.lane.b32.xlu0 %v956_v39, %s3499_s21  ;;  %v1325_v38 = vsel %vm52_vm2, %v1324_v34, %v1323_v33 }
 0xd93   :  { %v959_v42 = vpop.permute.xlu0 %958 }
 0xd94   :  { %962 = vst.msk [vmem:[#allocation2 + $0x8] sm:$0x3] %vm242_vm4, %v959_v42  ;;  %3194 = vmatmul.mubr.msk.f32.vlgmr.msra.gmra.mrb[10].mxu0 %vm131_vm5, %v959_v42 }
 0xd95   :  { %3211 = vmatpush3.msk.msra.mxu0 %vm57_vm0, %v3549_v1  ;;  %3212 = vmatprep.mubr.msk.f32.mxu0 %vm3495_vm1, %v3494_v0 }
 0xd96   :  { %3355 = vmatprep.subr.bf16.mxu0 %v3496_v7 }
 0xd98   :  { %3213 = vmatmul.mubr.msk.f32.vlgmr.msra.gmra.mrb[12].mxu0 %vm54_vm3, %v1325_v38 }
 0xd99   :  { %3357 = vmatpush3.bf16.msra.mxu0 %v3574_v8  ;;  %3221 = vmatprep.mubr.msk.f32.mxu0 %vm3495_vm1, %v3494_v0 }
 0xd9a   :  { %3219 = vmatprep.subr.mxu0 %v3494_v0 }
 0xd9b   :  { %v3748_v43 = vld [vmem:[#allocation2 + $0x8] sm:$0x3] }
 0xd9c   :  { %v2813_v44 = vrot.slane %v3748_v43, 5 }
 0xd9d   :  { %3220 = vmatpush3.msk.msra.mxu0 %vm57_vm0, %v3595_v11 }
 0xd9e   :  { %v2814_v45 = vsel %vm2694_vm8, %v2813_v44, %v2812_v12  ;;  %v1214_v12 = vpop.f32.mrb[12].mxu1  ;;  %3238 = vmatprep.subr.mxu0 %v3494_v0 }
 0xd9f   :  { %v3200_v13 = vpop.f32.mrb[13].mxu1  ;;  %v1215_v23 = vadd.f32 %v3613_v18, %v1214_v12 }
 0xe67   :  { %v1106_v46 = vpop.f32.mrb[10].mxu0 }
 0xe68   :  { %v1117_v47 = vadd.f32 %v1106_v46, %v3606_v14  ;;  %v3195_v48 = vpop.f32.mrb[11].mxu0  ;;  %v1110_v50 = vadd.f32 %v1106_v46, %v1035_v49 }
 0xe6a   :  { %1119 = vrot.lane.b32.xlu1 %v1117_v47, %s3498_s18  ;;  %v2959_v51 = vmul.f32 -1.442695, %v1110_v50 }
 0xe6b   :  { %v1394_v46 = vpop.f32.mrb[12].mxu0 }
 0xe6c   :  { %3426 = vpow2.f32 %v2959_v51  ;;  %v3214_v47 = vpop.f32.mrb[13].mxu0 }
 0xe76   :  { %v3427_v52 = vpop.eup %3426 }
 0xe77   :  { %v1114_v53 = vadd.f32 1.0, %v3427_v52 }
 0xe79   :  { %3428 = vrcp.f32 %v1114_v53 }
 0xe83   :  { %v3429_v54 = vpop.eup %3428 }
 0xe84   :  { %v1129_v63 = vsub.f32 1.0, %v3429_v54  ;;  %v1135_v5 = vmul.f32 %v3429_v54, %v956_v39 }
 0xedc   :  { %v1120_v55 = vpop.permute.xlu1 %1119 }
 0xedd   :  { %v1122_v56 = vmul.f32 %v3429_v54, %v1120_v55  ;;  %v1395_v55 = vadd.f32 %v3613_v18, %v1394_v46 }
 0xedf   :  { %1124 = vrot.lane.b32.xlu0 %v1122_v56, %s3497_s16 }
 0xf51   :  { %v1125_v57 = vpop.permute.xlu0 %1124 }
 0xf52   :  { %v1127_v58 = vadd.f32 %v1125_v57, %v1035_v49 }
 0xf54   :  { %3430 = vtanh.f32 %v1127_v58 }
 0xf5e   :  { %v3431_v62 = vpop.eup %3430 }
 0xf5f   :  { %1131 = vrot.lane.b32.xlu1 %v3431_v62, %s3499_s21 }
 0xfd1   :  { %v1132_v4 = vpop.permute.xlu1 %1131 }
 0xfd2   :  { %v1134_v6 = vmul.f32 %v1132_v4, %v1129_v63 }
 0xfd4   :  { %v1136_v10 = vadd.f32 %v1135_v5, %v1134_v6  ;;  %v3815_v5 = vld [vmem:[%s4080_s0 + $0x8] sm:$0xff]  ;;  %v3820_v6 = vld [vmem:[%s4080_s0 + $0x18] sm:$0xff] }
 0xfd6   :  { %1138 = vrot.lane.b32.xlu0 %v1136_v10, %s3499_s21 }
0x1048   :  { %v1139_v15 = vpop.permute.xlu0 %1138 }
0x1049   :  { %1142 = vst.msk [vmem:[#allocation2 + $0xa] sm:$0x3] %vm242_vm4, %v1139_v15  ;;  %3208 = vmatmul.mubr.msk.f32.vlgmr.msra.gmra.mrb[14].mxu1 %vm131_vm5, %v1139_v15 }
0x104a   :  { %3225 = vmatpush3.msk.msra.mxu1 %vm57_vm0, %v3549_v1  ;;  %3226 = vmatprep.mubr.msk.f32.mxu1 %vm3495_vm1, %v3494_v0 }
0x104b   :  { %3358 = vmatprep.subr.bf16.mxu1 %v3496_v7 }
0x1050   :  { %v3776_v16 = vld [vmem:[#allocation2 + $0xa] sm:$0x3] }
0x1051   :  { %v2815_v17 = vrot.slane %v3776_v16, 4 }
0x1053   :  { %v2816_v19 = vsel %vm2697_vm9, %v2815_v17, %v2814_v45 }
0x111c   :  { %v1286_v20 = vpop.f32.mrb[14].mxu1 }
0x111d   :  { %v1297_v21 = vadd.f32 %v1286_v20, %v3606_v14  ;;  %v3209_v22 = vpop.f32.mrb[15].mxu1  ;;  %v1290_v24 = vadd.f32 %v1286_v20, %v1215_v23 }
0x111f   :  { %1299 = vrot.lane.b32.xlu1 %v1297_v21, %s3498_s18  ;;  %v2964_v25 = vmul.f32 -1.442695, %v1290_v24 }
0x1121   :  { %3432 = vpow2.f32 %v2964_v25 }
0x112b   :  { %v3433_v26 = vpop.eup %3432 }
0x112c   :  { %v1294_v27 = vadd.f32 1.0, %v3433_v26 }
0x112e   :  { %3434 = vrcp.f32 %v1294_v27 }
0x1138   :  { %v3435_v28 = vpop.eup %3434 }
0x1139   :  { %v1309_v40 = vsub.f32 1.0, %v3435_v28  ;;  %v1315_v42 = vmul.f32 %v3435_v28, %v1136_v10  ;;  %v1505_v10 = vrot.slane %v3820_v6, 7 }
0x113b   :  { %v1506_v12 = vsel %vm52_vm2, %v1505_v10, %v3815_v5 }
0x113c   :  { %3227 = vmatmul.mubr.msk.f32.vlgmr.msra.gmra.mrb[16].mxu1 %vm54_vm3, %v1506_v12 }
0x113d   :  { %3360 = vmatpush3.bf16.msra.mxu1 %v3574_v8  ;;  %3235 = vmatprep.mubr.msk.f32.mxu1 %vm3495_vm1, %v3494_v0 }
0x113e   :  { %3233 = vmatprep.subr.mxu1 %v3494_v0 }
0x1141   :  { %3234 = vmatpush3.msk.msra.mxu1 %vm57_vm0, %v3595_v11 }
0x1142   :  { %3252 = vmatprep.subr.mxu1 %v3494_v0 }
0x1191   :  { %v1300_v29 = vpop.permute.xlu1 %1299 }
0x1192   :  { %v1302_v30 = vmul.f32 %v3435_v28, %v1300_v29 }
0x1194   :  { %1304 = vrot.lane.b32.xlu0 %v1302_v30, %s3497_s16 }
0x1206   :  { %v1305_v31 = vpop.permute.xlu0 %1304 }
0x1207   :  { %v1307_v32 = vadd.f32 %v1305_v31, %v1215_v23 }
0x1209   :  { %3436 = vtanh.f32 %v1307_v32 }
0x120f   :  { %v1575_v22 = vpop.f32.mrb[16].mxu1 }
0x1210   :  { %v3228_v23 = vpop.f32.mrb[17].mxu1  ;;  %v1576_v31 = vadd.f32 %v3613_v18, %v1575_v22 }
0x1213   :  { %v3437_v39 = vpop.eup %3436 }
0x1214   :  { %1311 = vrot.lane.b32.xlu1 %v3437_v39, %s3499_s21 }
0x1286   :  { %v1312_v41 = vpop.permute.xlu1 %1311 }
0x1287   :  { %v1314_v44 = vmul.f32 %v1312_v41, %v1309_v40 }
0x1289   :  { %v1316_v45 = vadd.f32 %v1315_v42, %v1314_v44 }
0x128b   :  { %1318 = vrot.lane.b32.xlu0 %v1316_v45, %s3499_s21 }
0x12fd   :  { %v1319_v48 = vpop.permute.xlu0 %1318 }
0x12fe   :  { %1322 = vst.msk [vmem:[#allocation2 + $0xc] sm:$0x3] %vm242_vm4, %v1319_v48  ;;  %3222 = vmatmul.mubr.msk.f32.vlgmr.msra.gmra.mrb[14].mxu0 %vm131_vm5, %v1319_v48 }
0x12ff   :  { %3239 = vmatpush3.msk.msra.mxu0 %vm57_vm0, %v3549_v1  ;;  %3240 = vmatprep.mubr.msk.f32.mxu0 %vm3495_vm1, %v3494_v0 }
0x1300   :  { %3361 = vmatprep.subr.bf16.mxu0 %v3496_v7 }
0x1305   :  { %v3804_v49 = vld [vmem:[#allocation2 + $0xc] sm:$0x3] }
0x1306   :  { %v2817_v50 = vrot.slane %v3804_v49, 3 }
0x1308   :  { %v2818_v51 = vsel %vm2700_vm10, %v2817_v50, %v2816_v19 }
0x13d1   :  { %v1466_v52 = vpop.f32.mrb[14].mxu0 }
0x13d2   :  { %v1477_v53 = vadd.f32 %v1466_v52, %v3606_v14  ;;  %v3223_v54 = vpop.f32.mrb[15].mxu0  ;;  %v1470_v56 = vadd.f32 %v1466_v52, %v1395_v55 }
0x13d4   :  { %1479 = vrot.lane.b32.xlu1 %v1477_v53, %s3498_s18  ;;  %v2969_v57 = vmul.f32 -1.442695, %v1470_v56 }
0x13d6   :  { %3438 = vpow2.f32 %v2969_v57 }
0x13e0   :  { %v3439_v58 = vpop.eup %3438 }
0x13e1   :  { %v1474_v59 = vadd.f32 1.0, %v3439_v58 }
0x13e3   :  { %3440 = vrcp.f32 %v1474_v59 }
0x13ed   :  { %v3441_v60 = vpop.eup %3440 }
0x13ee   :  { %v1489_v15 = vsub.f32 1.0, %v3441_v60  ;;  %v1495_v19 = vmul.f32 %v3441_v60, %v1316_v45  ;;  %v1684_v45 = vrot.slane %v3815_v5, 1 }
0x13f0   :  { %v1685_v46 = vsel %vm52_vm2, %v3820_v6, %v1684_v45 }
0x13f1   :  { %3241 = vmatmul.mubr.msk.f32.vlgmr.msra.gmra.mrb[16].mxu0 %vm54_vm3, %v1685_v46 }
0x13f2   :  { %3363 = vmatpush3.bf16.msra.mxu0 %v3574_v8  ;;  %3249 = vmatprep.mubr.msk.f32.mxu0 %vm3495_vm1, %v3494_v0 }
0x13f3   :  { %3247 = vmatprep.subr.mxu0 %v3494_v0 }
0x13f6   :  { %3248 = vmatpush3.msk.msra.mxu0 %vm57_vm0, %v3595_v11 }
0x13f7   :  { %3266 = vmatprep.subr.mxu0 %v3494_v0 }
0x1446   :  { %v1480_v61 = vpop.permute.xlu1 %1479 }
0x1447   :  { %v1482_v62 = vmul.f32 %v3441_v60, %v1480_v61 }
0x1449   :  { %1484 = vrot.lane.b32.xlu0 %v1482_v62, %s3497_s16 }
0x14bb   :  { %v1485_v63 = vpop.permute.xlu0 %1484 }
0x14bc   :  { %v1487_v4 = vadd.f32 %v1485_v63, %v1395_v55 }
0x14be   :  { %3442 = vtanh.f32 %v1487_v4 }
0x14c4   :  { %v1754_v54 = vpop.f32.mrb[16].mxu0 }
0x14c5   :  { %v3242_v55 = vpop.f32.mrb[17].mxu0  ;;  %v1755_v60 = vadd.f32 %v3613_v18, %v1754_v54 }
0x14c8   :  { %v3443_v13 = vpop.eup %3442 }
0x14c9   :  { %1491 = vrot.lane.b32.xlu1 %v3443_v13, %s3499_s21 }
0x153b   :  { %v1492_v17 = vpop.permute.xlu1 %1491 }
0x153c   :  { %v1494_v20 = vmul.f32 %v1492_v17, %v1489_v15  ;;  %v1863_v17 = vrot.slane %v3815_v5, 2 }
0x153e   :  { %v1496_v21 = vadd.f32 %v1495_v19, %v1494_v20  ;;  %v1864_v19 = vrot.slane %v3820_v6, 1 }
0x1540   :  { %1498 = vrot.lane.b32.xlu0 %v1496_v21, %s3499_s21  ;;  %v1865_v20 = vsel %vm52_vm2, %v1864_v19, %v1863_v17 }
0x15b2   :  { %v1499_v24 = vpop.permute.xlu0 %1498 }
0x15b3   :  { %1502 = vst.msk [vmem:[#allocation2 + $0xe] sm:$0x3] %vm242_vm4, %v1499_v24  ;;  %3236 = vmatmul.mubr.msk.f32.vlgmr.msra.gmra.mrb[18].mxu1 %vm131_vm5, %v1499_v24 }
0x15b4   :  { %3253 = vmatpush3.msk.msra.mxu1 %vm57_vm0, %v3549_v1  ;;  %3254 = vmatprep.mubr.msk.f32.mxu1 %vm3495_vm1, %v3494_v0 }
0x15b5   :  { %3364 = vmatprep.subr.bf16.mxu1 %v3496_v7 }
0x15b7   :  { %3255 = vmatmul.mubr.msk.f32.vlgmr.msra.gmra.mrb[20].mxu1 %vm54_vm3, %v1865_v20 }
0x15b8   :  { %3366 = vmatpush3.bf16.msra.mxu1 %v3574_v8  ;;  %3263 = vmatprep.mubr.msk.f32.mxu1 %vm3495_vm1, %v3494_v0 }
0x15b9   :  { %3261 = vmatprep.subr.mxu1 %v3494_v0 }
0x15ba   :  { %v3842_v25 = vld [vmem:[#allocation2 + $0xe] sm:$0x3] }
0x15bb   :  { %v2819_v26 = vrot.slane %v3842_v25, 2 }
0x15bc   :  { %3262 = vmatpush3.msk.msra.mxu1 %vm57_vm0, %v3595_v11 }
0x15bd   :  { %v3846_v27 = vsel %vm2703_vm11, %v2819_v26, %v2818_v51  ;;  %3370 = vmatprep.subr.bf16.mxu1 %v3496_v7 }
0x1686   :  { %v1647_v28 = vpop.f32.mrb[18].mxu1 }
0x1687   :  { %v1658_v29 = vadd.f32 %v1647_v28, %v3606_v14  ;;  %v3237_v30 = vpop.f32.mrb[19].mxu1  ;;  %v1651_v32 = vadd.f32 %v1647_v28, %v1576_v31 }
0x1689   :  { %1660 = vrot.lane.b32.xlu1 %v1658_v29, %s3498_s18  ;;  %v2974_v33 = vmul.f32 -1.442695, %v1651_v32 }
0x168a   :  { %v1934_v29 = vpop.f32.mrb[20].mxu1 }
0x168b   :  { %3444 = vpow2.f32 %v2974_v33  ;;  %v3256_v30 = vpop.f32.mrb[21].mxu1 }
0x1695   :  { %v3445_v34 = vpop.eup %3444 }
0x1696   :  { %v1655_v38 = vadd.f32 1.0, %v3445_v34 }
0x1698   :  { %3446 = vrcp.f32 %v1655_v38  ;;  %v1935_v38 = vadd.f32 %v3613_v18, %v1934_v29 }
0x16a2   :  { %v3447_v39 = vpop.eup %3446 }
0x16a3   :  { %v1670_v48 = vsub.f32 1.0, %v3447_v39  ;;  %v1676_v51 = vmul.f32 %v3447_v39, %v1496_v21 }
0x16fb   :  { %v1661_v40 = vpop.permute.xlu1 %1660 }
0x16fc   :  { %v1663_v41 = vmul.f32 %v3447_v39, %v1661_v40 }
0x16fe   :  { %1665 = vrot.lane.b32.xlu0 %v1663_v41, %s3497_s16 }
0x1770   :  { %v1666_v42 = vpop.permute.xlu0 %1665 }
0x1771   :  { %v1668_v44 = vadd.f32 %v1666_v42, %v1576_v31 }
0x1773   :  { %3448 = vtanh.f32 %v1668_v44 }
0x177d   :  { %v3449_v47 = vpop.eup %3448 }
0x177e   :  { %1672 = vrot.lane.b32.xlu1 %v3449_v47, %s3499_s21 }
0x17f0   :  { %v1673_v50 = vpop.permute.xlu1 %1672 }
0x17f1   :  { %v1675_v52 = vmul.f32 %v1673_v50, %v1670_v48  ;;  %v2043_v50 = vrot.slane %v3815_v5, 3 }
0x17f3   :  { %v1677_v53 = vadd.f32 %v1676_v51, %v1675_v52  ;;  %v2044_v51 = vrot.slane %v3820_v6, 2 }
0x17f5   :  { %1679 = vrot.lane.b32.xlu0 %v1677_v53, %s3499_s21  ;;  %v2045_v52 = vsel %vm52_vm2, %v2044_v51, %v2043_v50 }
0x1867   :  { %v1680_v56 = vpop.permute.xlu0 %1679 }
0x1868   :  { %1683 = vst.msk [vmem:[#allocation2 + $0x10] sm:$0x3] %vm242_vm4, %v1680_v56  ;;  %3250 = vmatmul.mubr.msk.f32.vlgmr.msra.gmra.mrb[18].mxu0 %vm131_vm5, %v1680_v56 }
0x1869   :  { %3267 = vmatpush3.msk.msra.mxu0 %vm57_vm0, %v3549_v1  ;;  %3268 = vmatprep.mubr.msk.f32.mxu0 %vm3495_vm1, %v3494_v0 }
0x186a   :  { %3367 = vmatprep.subr.bf16.mxu0 %v3496_v7 }
0x186c   :  { %3269 = vmatmul.mubr.msk.f32.vlgmr.msra.gmra.mrb[20].mxu0 %vm54_vm3, %v2045_v52 }
0x186d   :  { %3369 = vmatpush3.bf16.msra.mxu0 %v3574_v8  ;;  %3277 = vmatprep.mubr.msk.f32.mxu0 %vm3495_vm1, %v3494_v0 }
0x186e   :  { %3275 = vmatprep.subr.mxu0 %v3494_v0 }
0x1871   :  { %3276 = vmatpush3.msk.msra.mxu0 %vm57_vm0, %v3595_v11 }
0x1872   :  { %3373 = vmatprep.subr.bf16.mxu0 %v3496_v7 }
0x193b   :  { %v1826_v57 = vpop.f32.mrb[18].mxu0 }
0x193c   :  { %v1837_v58 = vadd.f32 %v1826_v57, %v3606_v14  ;;  %v3251_v59 = vpop.f32.mrb[19].mxu0  ;;  %v1830_v61 = vadd.f32 %v1826_v57, %v1755_v60 }
0x193e   :  { %1839 = vrot.lane.b32.xlu1 %v1837_v58, %s3498_s18  ;;  %v2979_v62 = vmul.f32 -1.442695, %v1830_v61 }
0x193f   :  { %v2114_v57 = vpop.f32.mrb[20].mxu0 }
0x1940   :  { %3450 = vpow2.f32 %v2979_v62  ;;  %v3270_v58 = vpop.f32.mrb[21].mxu0 }
0x194a   :  { %v3451_v63 = vpop.eup %3450 }
0x194b   :  { %v1834_v4 = vadd.f32 1.0, %v3451_v63  ;;  %v2115_v63 = vadd.f32 %v3613_v18, %v2114_v57 }
0x194d   :  { %3452 = vrcp.f32 %v1834_v4 }
0x1957   :  { %v3453_v1 = vpop.eup %3452 }
0x1958   :  { %v1849_v22 = vsub.f32 1.0, %v3453_v1  ;;  %v1855_v24 = vmul.f32 %v3453_v1, %v1677_v53 }
0x19b0   :  { %v1840_v10 = vpop.permute.xlu1 %1839 }
0x19b1   :  { %v1842_v12 = vmul.f32 %v3453_v1, %v1840_v10 }
0x19b3   :  { %1844 = vrot.lane.b32.xlu0 %v1842_v12, %s3497_s16 }
0x1a25   :  { %v1845_v13 = vpop.permute.xlu0 %1844 }
0x1a26   :  { %v1847_v15 = vadd.f32 %v1845_v13, %v1755_v60 }
0x1a28   :  { %3454 = vtanh.f32 %v1847_v15 }
0x1a32   :  { %v3455_v21 = vpop.eup %3454 }
0x1a33   :  { %1851 = vrot.lane.b32.xlu1 %v3455_v21, %s3499_s21 }
0x1aa5   :  { %v1852_v23 = vpop.permute.xlu1 %1851 }
0x1aa6   :  { %v1854_v26 = vmul.f32 %v1852_v23, %v1849_v22 }
0x1aa8   :  { %v1856_v28 = vadd.f32 %v1855_v24, %v1854_v26 }
0x1aaa   :  { %1858 = vrot.lane.b32.xlu0 %v1856_v28, %s3499_s21 }
0x1b1c   :  { %v1859_v31 = vpop.permute.xlu0 %1858 }
0x1b1d   :  { %1862 = vst.msk [vmem:[#allocation2 + $0x12] sm:$0x3] %vm242_vm4, %v1859_v31  ;;  %3264 = vmatmul.mubr.msk.f32.vlgmr.msra.gmra.mrb[22].mxu1 %vm131_vm5, %v1859_v31  ;;  %v3948_v31 = vld [vmem:[%s4083_s3] ss:$0 sm:$0xff] }
0x1b1e   :  { %3372 = vmatpush3.bf16.msra.mxu1 %v3574_v8  ;;  %3286 = vmatprep.mubr.msk.f32.mxu1 %vm3495_vm1, %v3494_v0 }
0x1b1f   :  { %3284 = vmatprep.subr.mxu1 %v3494_v0 }
0x1b22   :  { %3285 = vmatpush3.msk.msra.mxu1 %vm57_vm0, %v3595_v11  ;;  %v3924_v11 = vld [vmem:[%s4081_s2 + $0x10] sm:$0xf] }
0x1b23   :  { %3376 = vmatprep.subr.bf16.mxu1 %v3496_v7 }
0x1bf0   :  { %v2006_v32 = vpop.f32.mrb[22].mxu1 }
0x1bf1   :  { %v2017_v33 = vadd.f32 %v2006_v32, %v3606_v14  ;;  %v3265_v34 = vpop.f32.mrb[23].mxu1  ;;  %v2010_v39 = vadd.f32 %v2006_v32, %v1935_v38 }
0x1bf3   :  { %2019 = vrot.lane.b32.xlu1 %v2017_v33, %s3498_s18  ;;  %v2984_v40 = vmul.f32 -1.442695, %v2010_v39 }
0x1bf5   :  { %3456 = vpow2.f32 %v2984_v40 }
0x1bff   :  { %v3457_v41 = vpop.eup %3456 }
0x1c00   :  { %v2014_v42 = vadd.f32 1.0, %v3457_v41 }
0x1c02   :  { %3458 = vrcp.f32 %v2014_v42 }
0x1c0c   :  { %v3459_v44 = vpop.eup %3458 }
0x1c0d   :  { %v2029_v5 = vsub.f32 1.0, %v3459_v44  ;;  %v2035_v54 = vmul.f32 %v3459_v44, %v1856_v28 }
0x1c65   :  { %v2020_v45 = vpop.permute.xlu1 %2019 }
0x1c66   :  { %v2022_v46 = vmul.f32 %v3459_v44, %v2020_v45 }
0x1c68   :  { %2024 = vrot.lane.b32.xlu0 %v2022_v46, %s3497_s16 }
0x1cda   :  { %v2025_v47 = vpop.permute.xlu0 %2024 }
0x1cdb   :  { %v2027_v48 = vadd.f32 %v2025_v47, %v1935_v38 }
0x1cdd   :  { %3460 = vtanh.f32 %v2027_v48 }
0x1ce7   :  { %v3461_v53 = vpop.eup %3460 }
0x1ce8   :  { %2031 = vrot.lane.b32.xlu1 %v3461_v53, %s3499_s21 }
0x1d5a   :  { %v2032_v6 = vpop.permute.xlu1 %2031 }
0x1d5b   :  { %v2034_v55 = vmul.f32 %v2032_v6, %v2029_v5 }
0x1d5d   :  { %v2036_v56 = vadd.f32 %v2035_v54, %v2034_v55 }
0x1d5f   :  { %2038 = vrot.lane.b32.xlu0 %v2036_v56, %s3499_s21 }
0x1dd1   :  { %v2039_v59 = vpop.permute.xlu0 %2038 }
0x1dd2   :  { %2042 = vst.msk [vmem:[#allocation2 + $0x14] sm:$0x3] %vm242_vm4, %v2039_v59  ;;  %3278 = vmatmul.mubr.msk.f32.vlgmr.msra.gmra.mrb[22].mxu0 %vm131_vm5, %v2039_v59 }
0x1dd3   :  { %3375 = vmatpush3.bf16.msra.mxu0 %v3574_v8  ;;  %3295 = vmatprep.mubr.msk.f32.mxu0 %vm3495_vm1, %v3494_v0 }
0x1dd4   :  { %3293 = vmatprep.subr.mxu0 %v3494_v0 }
0x1dd7   :  { %3294 = vmatpush3.msk.msra.mxu0 %vm57_vm0, %v3924_v11 }
0x1dd8   :  { %3379 = vmatprep.subr.bf16.mxu0 %v3496_v7 }
0x1ea5   :  { %v2186_v60 = vpop.f32.mrb[22].mxu0 }
0x1ea6   :  { %v2197_v61 = vadd.f32 %v2186_v60, %v3606_v14  ;;  %v3279_v62 = vpop.f32.mrb[23].mxu0  ;;  %v2190_v4 = vadd.f32 %v2186_v60, %v2115_v63 }
0x1ea8   :  { %2199 = vrot.lane.b32.xlu1 %v2197_v61, %s3498_s18  ;;  %v2989_v1 = vmul.f32 -1.442695, %v2190_v4 }
0x1eaa   :  { %3462 = vpow2.f32 %v2989_v1 }
0x1eb4   :  { %v3463_v10 = vpop.eup %3462 }
0x1eb5   :  { %v2194_v12 = vadd.f32 1.0, %v3463_v10  ;;  %v2685_v10 = vrot.slane %v3687_v36, 7 }
0x1eb7   :  { %3464 = vrcp.f32 %v2194_v12  ;;  %v2687_v12 = vrot.slane %v3689_v37, 6 }
0x1ec1   :  { %v3465_v13 = vpop.eup %3464 }
0x1ec2   :  { %v2209_v21 = vsub.f32 1.0, %v3465_v13  ;;  %v2215_v18 = vmul.f32 %v3465_v13, %v2036_v56 }
0x1f1a   :  { %v2200_v15 = vpop.permute.xlu1 %2199 }
0x1f1b   :  { %v2202_v17 = vmul.f32 %v3465_v13, %v2200_v15  ;;  %v2690_v13 = vrot.slane %v3720_v9, 5  ;;  %v2693_v15 = vrot.slane %v3748_v43, 4 }
0x1f1d   :  { %2204 = vrot.lane.b32.xlu0 %v2202_v17, %s3497_s16  ;;  %v2686_v17 = vsel %vm52_vm2, %v2685_v10, %v3685_v35 }
0x1f8f   :  { %v2205_v7 = vpop.permute.xlu0 %2204 }
0x1f90   :  { %v2207_v19 = vadd.f32 %v2205_v7, %v2115_v63  ;;  %v2696_v7 = vrot.slane %v3776_v16, 3 }
0x1f92   :  { %3466 = vtanh.f32 %v2207_v19  ;;  %v2689_v19 = vsel %vm2688_vm6, %v2687_v12, %v2686_v17 }
0x1f9c   :  { %v3467_v20 = vpop.eup %3466 }
0x1f9d   :  { %2211 = vrot.lane.b32.xlu1 %v3467_v20, %s3499_s21  ;;  %v2699_v20 = vrot.slane %v3804_v49, 2 }
0x200f   :  { %v2212_v22 = vpop.permute.xlu1 %2211 }
0x2010   :  { %v2214_v23 = vmul.f32 %v2212_v22, %v2209_v21  ;;  %v2692_v21 = vsel %vm2691_vm7, %v2690_v13, %v2689_v19  ;;  %v2702_v22 = vrot.slane %v3842_v25, 1 }
0x2011   :  { %v2695_v36 = vsel %vm2694_vm8, %v2693_v15, %v2692_v21 }
0x2012   :  { %v2216_v24 = vadd.f32 %v2215_v18, %v2214_v23  ;;  %v2698_v37 = vsel %vm2697_vm9, %v2696_v7, %v2695_v36 }
0x2013   :  { %v2701_v43 = vsel %vm2700_vm10, %v2699_v20, %v2698_v37 }
0x2014   :  { %2218 = vrot.lane.b32.xlu0 %v2216_v24, %s3499_s21  ;;  %v2704_v35 = vsel %vm2703_vm11, %v2702_v22, %v2701_v43 }
0x2086   :  { %v2219_v26 = vpop.permute.xlu0 %2218 }
0x2087   :  { %2222 = vst.msk [vmem:[#allocation2 + $0x16] sm:$0x3] %vm242_vm4, %v2219_v26  ;;  %3287 = vmatmul.mubr.msk.f32.vlgmr.msra.gmra.mrb[24].mxu1 %vm131_vm5, %v2219_v26 }
0x2088   :  { %3378 = vmatpush3.bf16.msra.mxu1 %v3574_v8  ;;  %3304 = vmatprep.mubr.msk.f32.mxu1 %vm3495_vm1, %v3494_v0 }
0x2089   :  { %3302 = vmatprep.subr.mxu1 %v3494_v0 }
0x208c   :  { %3303 = vmatpush3.msk.msra.mxu1 %vm57_vm0, %v3924_v11 }
0x215a   :  { %v2291_v28 = vpop.f32.mrb[24].mxu1 }
0x215b   :  { %v2302_v29 = vadd.f32 %v2291_v28, %v3606_v14  ;;  %v3288_v30 = vpop.f32.mrb[25].mxu1  ;;  %v2295_v32 = vadd.f32 %v3948_v31, %v2291_v28 }
0x215d   :  { %2304 = vrot.lane.b32.xlu1 %v2302_v29, %s3498_s18  ;;  %v2992_v33 = vmul.f32 -1.442695, %v2295_v32 }
0x215f   :  { %3468 = vpow2.f32 %v2992_v33 }
0x2169   :  { %v3469_v34 = vpop.eup %3468 }
0x216a   :  { %v2299_v38 = vadd.f32 1.0, %v3469_v34 }
0x216c   :  { %3470 = vrcp.f32 %v2299_v38 }
0x2176   :  { %v3471_v39 = vpop.eup %3470 }
0x2177   :  { %v2314_v46 = vsub.f32 1.0, %v3471_v39  ;;  %v2320_v48 = vmul.f32 %v3471_v39, %v2216_v24 }
0x21cf   :  { %v2305_v40 = vpop.permute.xlu1 %2304 }
0x21d0   :  { %v2307_v41 = vmul.f32 %v3471_v39, %v2305_v40 }
0x21d2   :  { %2309 = vrot.lane.b32.xlu0 %v2307_v41, %s3497_s16 }
0x2244   :  { %v2310_v42 = vpop.permute.xlu0 %2309 }
0x2245   :  { %v2312_v44 = vadd.f32 %v3948_v31, %v2310_v42 }
0x2247   :  { %3472 = vtanh.f32 %v2312_v44 }
0x2251   :  { %v3473_v45 = vpop.eup %3472 }
0x2252   :  { %2316 = vrot.lane.b32.xlu1 %v3473_v45, %s3499_s21 }
0x22c4   :  { %v2317_v47 = vpop.permute.xlu1 %2316 }
0x22c5   :  { %v2319_v50 = vmul.f32 %v2317_v47, %v2314_v46 }
0x22c7   :  { %v2321_v51 = vadd.f32 %v2320_v48, %v2319_v50 }
0x22c9   :  { %2323 = vrot.lane.b32.xlu0 %v2321_v51, %s3499_s21 }
0x233b   :  { %v2324_v52 = vpop.permute.xlu0 %2323 }
0x233c   :  { %2327 = vst.msk [vmem:[#allocation2 + $0x18] sm:$0x3] %vm242_vm4, %v2324_v52  ;;  %3296 = vmatmul.mubr.msk.f32.vlgmr.msra.gmra.mrb[24].mxu0 %vm131_vm5, %v2324_v52 }
0x233d   :  { %3381 = vmatpush3.bf16.msra.mxu0 %v3574_v8  ;;  %3313 = vmatprep.mubr.msk.f32.mxu0 %vm3495_vm1, %v3494_v0 }
0x233e   :  { %3311 = vmatprep.subr.mxu0 %v3494_v0 }
0x2341   :  { %3312 = vmatpush3.msk.msra.mxu0 %vm57_vm0, %v3924_v11 }
0x240f   :  { %v2396_v53 = vpop.f32.mrb[24].mxu0 }
0x2410   :  { %v2407_v5 = vadd.f32 %v2396_v53, %v3606_v14  ;;  %v3297_v6 = vpop.f32.mrb[25].mxu0  ;;  %v2400_v54 = vadd.f32 %v3948_v31, %v2396_v53 }
0x2412   :  { %2409 = vrot.lane.b32.xlu1 %v2407_v5, %s3498_s18  ;;  %v2995_v55 = vmul.f32 -1.442695, %v2400_v54 }
0x2414   :  { %3474 = vpow2.f32 %v2995_v55  ;;  %v2643_v55 = vld [vmem:[%s4084_s5] sm:$0xff] }
0x241e   :  { %v3475_v56 = vpop.eup %3474 }
0x241f   :  { %v2404_v8 = vadd.f32 1.0, %v3475_v56  ;;  %v2644_v56 = vld [vmem:[%s4084_s5 + $0x8] sm:$0xff] }
0x2421   :  { %3476 = vrcp.f32 %v2404_v8  ;;  %v3382_v8 = vpack.c.bf16 %v2644_v56, %v2643_v55 }
0x2423   :  { %3383 = vmatprep.subr.bf16.mxu1 %v3382_v8  ;;  %3387 = vmatprep.subr.bf16.mxu0 %v3382_v8 }
0x242b   :  { %v3477_v57 = vpop.eup %3476 }
0x242c   :  { %v2419_v61 = vsub.f32 1.0, %v3477_v57  ;;  %v2425_v63 = vmul.f32 %v3477_v57, %v2321_v51 }
0x2484   :  { %v2410_v58 = vpop.permute.xlu1 %2409 }
0x2485   :  { %v2412_v59 = vmul.f32 %v3477_v57, %v2410_v58  ;;  %v2645_v57 = vld [vmem:[%s4084_s5 + $0x10] sm:$0xf] }
0x2487   :  { %2414 = vrot.lane.b32.xlu0 %v2412_v59, %s3497_s16 }
0x24f9   :  { %v2415_v0 = vpop.permute.xlu0 %2414 }
0x24fa   :  { %v2417_v11 = vadd.f32 %v3948_v31, %v2415_v0 }
0x24fc   :  { %3478 = vtanh.f32 %v2417_v11 }
0x2506   :  { %v3479_v60 = vpop.eup %3478 }
0x2507   :  { %2421 = vrot.lane.b32.xlu1 %v3479_v60, %s3499_s21  ;;  %v2656_v60 = vld [vmem:[#allocation2 + $0x12] sm:$0x3] }
0x2508   :  { %v2705_v10 = vrot.slane %v2656_v60, 7 }
0x2579   :  { %v2422_v62 = vpop.permute.xlu1 %2421 }
0x257a   :  { %v2424_v4 = vmul.f32 %v2422_v62, %v2419_v61  ;;  %v2657_v61 = vld [vmem:[#allocation2 + $0x14] sm:$0x3] }
0x257b   :  { %v2707_v13 = vrot.slane %v2657_v61, 6  ;;  %v2823_v15 = vrot.slane %v2657_v61, 7 }
0x257c   :  { %v2426_v1 = vadd.f32 %v2425_v63, %v2424_v4  ;;  %v2655_v63 = vld [vmem:[#allocation2 + $0x10] sm:$0x3]  ;;  %v2658_v4 = vld [vmem:[#allocation2 + $0x16] sm:$0x3] }
0x257d   :  { %v2709_v7 = vrot.slane %v2658_v4, 5  ;;  %v2821_v19 = vrot.slane %v2655_v63, 1  ;;  %v2825_v20 = vrot.slane %v2658_v4, 6  ;;  %v2706_v36 = vsel %vm52_vm2, %v2705_v10, %v2655_v63 }
0x257e   :  { %2428 = vrot.lane.b32.xlu0 %v2426_v1, %s3499_s21 }
0x25f0   :  { %v2429_v9 = vpop.permute.xlu0 %2428 }
0x25f1   :  { %2432 = vst.msk [vmem:[#allocation2 + $0x1a] sm:$0x3] %vm242_vm4, %v2429_v9  ;;  %3305 = vmatmul.mubr.msk.f32.vlgmr.msra.gmra.mrb[26].mxu1 %vm131_vm5, %v2429_v9  ;;  %v2822_v9 = vsel %vm52_vm2, %v2656_v60, %v2821_v19 }
0x25f2   :  { %3322 = vmatprep.mubr.msk.f32.mxu1 %vm131_vm5, %v2704_v35  ;;  %3385 = vmatpush3.bf16.msra.mxu1 %v3382_v8  ;;  %v2708_v35 = vsel %vm2688_vm6, %v2707_v13, %v2706_v36 }
0x25f3   :  { %3320 = vmatprep.subr.msk.mxu1 %vm57_vm0, %v2645_v57 }
0x25f6   :  { %3321 = vmatpush3.msk.msra.mxu1 %vm57_vm0, %v2645_v57 }
0x25f8   :  { %v2660_v12 = vld [vmem:[#allocation2 + $0x1a] sm:$0x3] }
0x25f9   :  { %v2713_v37 = vrot.slane %v2660_v12, 3  ;;  %v2829_v43 = vrot.slane %v2660_v12, 4 }
0x26c4   :  { %v2501_v16 = vpop.f32.mrb[26].mxu1 }
0x26c5   :  { %v2512_v49 = vadd.f32 %v2501_v16, %v3606_v14  ;;  %v3306_v18 = vpop.f32.mrb[27].mxu1  ;;  %v2505_v25 = vadd.f32 %v3948_v31, %v2501_v16 }
0x26c7   :  { %2514 = vrot.lane.b32.xlu1 %v2512_v49, %s3498_s18  ;;  %v2998_v23 = vmul.f32 -1.442695, %v2505_v25  ;;  %v2824_v49 = vsel %vm2688_vm6, %v2823_v15, %v2822_v9  ;;  %v2710_v25 = vsel %vm2691_vm7, %v2709_v7, %v2708_v35 }
0x26c9   :  { %3480 = vpow2.f32 %v2998_v23  ;;  %v2826_v23 = vsel %vm2691_vm7, %v2825_v20, %v2824_v49 }
0x26d3   :  { %v3481_v24 = vpop.eup %3480 }
0x26d4   :  { %v2509_v26 = vadd.f32 1.0, %v3481_v24 }
0x26d6   :  { %3482 = vrcp.f32 %v2509_v26 }
0x26e0   :  { %v3483_v28 = vpop.eup %3482 }
0x26e1   :  { %v2524_v38 = vsub.f32 1.0, %v3483_v28  ;;  %v2530_v40 = vmul.f32 %v3483_v28, %v2426_v1  ;;  %v2659_v1 = vld [vmem:[#allocation2 + $0x18] sm:$0x3] }
0x26e2   :  { %v2711_v21 = vrot.slane %v2659_v1, 4  ;;  %v2827_v22 = vrot.slane %v2659_v1, 5 }
0x26e4   :  { %v2712_v26 = vsel %vm2694_vm8, %v2711_v21, %v2710_v25 }
0x2739   :  { %v2515_v29 = vpop.permute.xlu1 %2514 }
0x273a   :  { %v2517_v30 = vmul.f32 %v3483_v28, %v2515_v29  ;;  %v2828_v28 = vsel %vm2694_vm8, %v2827_v22, %v2826_v23  ;;  %v2714_v29 = vsel %vm2697_vm9, %v2713_v37, %v2712_v26 }
0x273c   :  { %2519 = vrot.lane.b32.xlu0 %v2517_v30, %s3497_s16 }
0x27ae   :  { %v2520_v32 = vpop.permute.xlu0 %2519 }
0x27af   :  { %v2522_v33 = vadd.f32 %v3948_v31, %v2520_v32  ;;  %v2830_v32 = vsel %vm2697_vm9, %v2829_v43, %v2828_v28 }
0x27b1   :  { %3484 = vtanh.f32 %v2522_v33 }
0x27bb   :  { %v3485_v34 = vpop.eup %3484 }
0x27bc   :  { %2526 = vrot.lane.b32.xlu1 %v3485_v34, %s3499_s21 }
0x282e   :  { %v2527_v39 = vpop.permute.xlu1 %2526 }
0x282f   :  { %v2529_v41 = vmul.f32 %v2527_v39, %v2524_v38 }
0x2831   :  { %v2531_v42 = vadd.f32 %v2530_v40, %v2529_v41  ;;  %v3002_v41 = vld [vmem:[%s4086_s6] ss:$0 sm:$0xff] }
0x2833   :  { %2533 = vrot.lane.b32.xlu0 %v2531_v42, %s3499_s21 }
0x28a5   :  { %v2534_v44 = vpop.permute.xlu0 %2533 }
0x28a6   :  { %2537 = vst.msk [vmem:[#allocation2 + $0x1c] sm:$0x3] %vm242_vm4, %v2534_v44  ;;  %3314 = vmatmul.mubr.msk.f32.vlgmr.msra.gmra.mrb[26].mxu0 %vm131_vm5, %v2534_v44 }
0x28a7   :  { %3331 = vmatprep.mubr.msk.f32.mxu0 %vm131_vm5, %v3846_v27  ;;  %3389 = vmatpush3.bf16.msra.mxu0 %v3382_v8 }
0x28a8   :  { %3329 = vmatprep.subr.msk.mxu0 %vm57_vm0, %v2645_v57 }
0x28ab   :  { %3330 = vmatpush3.msk.msra.mxu0 %vm57_vm0, %v2645_v57 }
0x28ad   :  { %v2661_v17 = vld [vmem:[#allocation2 + $0x1c] sm:$0x3] }
0x28ae   :  { %v2715_v16 = vrot.slane %v2661_v17, 2  ;;  %v2831_v18 = vrot.slane %v2661_v17, 3 }
0x28b0   :  { %v2716_v34 = vsel %vm2700_vm10, %v2715_v16, %v2714_v29  ;;  %v2832_v38 = vsel %vm2700_vm10, %v2831_v18, %v2830_v32 }
0x2979   :  { %v2606_v45 = vpop.f32.mrb[26].mxu0 }
0x297a   :  { %v2617_v46 = vadd.f32 %v2606_v45, %v3606_v14  ;;  %v3315_v47 = vpop.f32.mrb[27].mxu0  ;;  %v2610_v48 = vadd.f32 %v3948_v31, %v2606_v45 }
0x297c   :  { %2619 = vrot.lane.b32.xlu1 %v2617_v46, %s3498_s18  ;;  %v3001_v50 = vmul.f32 -1.442695, %v2610_v48 }
0x297e   :  { %3486 = vpow2.f32 %v3001_v50 }
0x2988   :  { %v3487_v51 = vpop.eup %3486 }
0x2989   :  { %v2614_v52 = vadd.f32 1.0, %v3487_v51 }
0x298b   :  { %3488 = vrcp.f32 %v2614_v52 }
0x2995   :  { %v3489_v53 = vpop.eup %3488 }
0x2996   :  { %v2635_v59 = vmul.f32 %v3489_v53, %v2531_v42 }
0x29ee   :  { %v2620_v5 = vpop.permute.xlu1 %2619 }
0x29ef   :  { %v2622_v6 = vmul.f32 %v3489_v53, %v2620_v5 }
0x29f1   :  { %2624 = vrot.lane.b32.xlu0 %v2622_v6, %s3497_s16 }
0x2a63   :  { %v2625_v54 = vpop.permute.xlu0 %2624 }
0x2a64   :  { %v2627_v27 = vadd.f32 %v3948_v31, %v2625_v54  ;;  %v2629_v31 = vsub.f32 1.0, %v3489_v53 }
0x2a66   :  { %3490 = vtanh.f32 %v2627_v27 }
0x2a70   :  { %v3491_v14 = vpop.eup %3490 }
0x2a71   :  { %2631 = vrot.lane.b32.xlu1 %v3491_v14, %s3499_s21 }
0x2ae3   :  { %v2632_v58 = vpop.permute.xlu1 %2631 }
0x2ae4   :  { %v2634_v0 = vmul.f32 %v2632_v58, %v2629_v31 }
0x2ae6   :  { %v2636_v11 = vadd.f32 %v2635_v59, %v2634_v0 }
0x2ae8   :  { %2638 = vrot.lane.b32.xlu0 %v2636_v11, %s3499_s21 }
0x2b5a   :  { %v2639_v62 = vpop.permute.xlu0 %2638 }
0x2b5b   :  { %2642 = vst.msk [vmem:[#allocation2 + $0x1e] sm:$0x3] %vm242_vm4, %v2639_v62 }
0x2b62   :  { %v2662_v24 = vld [vmem:[#allocation2 + $0x1e] sm:$0x3] }
0x2b63   :  { %v2717_v30 = vrot.slane %v2662_v24, 1  ;;  %v2833_v33 = vrot.slane %v2662_v24, 2 }
0x2b65   :  { %v2718_v39 = vsel %vm2703_vm11, %v2717_v30, %v2716_v34  ;;  %v2834_v40 = vsel %vm2703_vm11, %v2833_v33, %v2832_v38 }
0x2b66   :  { %3323 = vmatmul.mubr.msk.f32.vlgmr.msra.gmra.mrb[28].mxu1 %vm131_vm5, %v2718_v39  ;;  %3332 = vmatmul.mubr.msk.f32.vlgmr.msra.gmra.mrb[28].mxu0 %vm131_vm5, %v2834_v40 }
0x2c39   :  { %v3324_v42 = vpop.f32.mrb[28].mxu1  ;;  %v3333_v44 = vpop.f32.mrb[28].mxu0 }
0x2c3a   :  { %v2798_v45 = vadd.f32 %v3324_v42, %v3002_v41  ;;  %v2911_v46 = vadd.f32 %v3333_v44, %v3002_v41  ;;  %v2792_v47 = vpop.f32.mrb[29].mxu1  ;;  %v2905_v48 = vpop.f32.mrb[29].mxu0 }
0x2c3b   :  { %v2793_v50 = vadd.f32 %v3002_v41, %v2792_v47  ;;  %v2906_v51 = vadd.f32 %v3002_v41, %v2905_v48 }
0x2c3c   :  { %2804 = vst.msk [vmem:[%s4085_s7 + $0xc] sm:$0xff] %vm54_vm3, %v2798_v45  ;;  %2806 = vst.msk [vmem:[%s4087_s8 + $0x8] sm:$0xff] %vm54_vm3, %v2798_v45 }
0x2c3d   :  { %3011 = vst.msk [vmem:[%s4085_s7 + $0x24] sm:$0xff] %vm54_vm3, %v2911_v46  ;;  %3013 = vst.msk [vmem:[%s4087_s8 + $0x18] sm:$0xff] %vm54_vm3, %v2911_v46 }
0x2c3e   :  { %2803 = vst.msk [vmem:[%s4085_s7 + $0x4] sm:$0xff] %vm54_vm3, %v2793_v50  ;;  %2805 = vst.msk [vmem:[%s4087_s8] sm:$0xff] %vm54_vm3, %v2793_v50 }
0x2c3f   :  { %3010 = vst.msk [vmem:[%s4085_s7 + $0x1c] sm:$0xff] %vm54_vm3, %v2906_v51  ;;  %3012 = vst.msk [vmem:[%s4087_s8 + $0x10] sm:$0xff] %vm54_vm3, %v2906_v51 }

</bundles_post_ra>
